<compile_context>
chip_gen: v7x
topology: tpu7x:2x2x1
jax: 0.10.0
libtpu: 0.0.40
codegen_flags: <defaults>
</compile_context>

<pallas_src>
import jax
import jax.numpy as jnp
from jax import lax
from jax.experimental import pallas as pl
from jax.experimental.pallas import tpu as pltpu

EPS = 1e-5


def _bn_kernel(x_ref, g_ref, b_ref, o_ref):
    # x_ref: (Cb, M) f32 channel-major tile; g_ref / b_ref: (Cb, 1) f32.
    x = x_ref[...]
    m = x.shape[1]
    inv_m = jnp.float32(1.0 / m)

    # Single pass over x: per-channel sum and sum of squares.
    s1 = jnp.sum(x, axis=1, keepdims=True)
    s2 = jnp.sum(x * x, axis=1, keepdims=True)

    mean = s1 * inv_m
    var = s2 * inv_m - mean * mean            # biased batch variance
    inv = lax.rsqrt(var + EPS)                # EUP slot (free vs VALU)

    # Fold gamma/beta into per-channel scale/shift (computed once, (Cb,1)).
    scale = inv * g_ref[...]
    shift = b_ref[...] - mean * scale

    # 2 VALU ops per element; broadcasts hoisted into this single expression.
    o_ref[...] = x * scale + shift


def _channel_blocks(c):
    """2-way channel split on v7x (2 TensorCores/chip); 1 block elsewhere."""
    try:
        kind = jax.devices()[0].device_kind.lower()
    except Exception:
        return 1
    if ("v7" in kind or "tpu7" in kind or "7x" in kind):
        if c % 2 == 0 and (c // 2) % 8 == 0:
            return 2
    return 1


def batchnorm2d(x, gamma, beta):
    """x: (N, C, H, W) float32; gamma, beta: (C,) float32."""
    n, c, h, w = x.shape
    m = n * h * w

    if n == 1:
        # No transpose: (1, C, H, W) -> (C, H*W) is a layout-preserving reshape.
        x2d = x.reshape(c, m)
    else:
        # General path (not hit by this module's N=1 shape).
        x2d = jnp.transpose(x, (1, 0, 2, 3)).reshape(c, m)

    g2d = gamma.reshape(c, 1).astype(jnp.float32)
    b2d = beta.reshape(c, 1).astype(jnp.float32)

    nblk = _channel_blocks(c)
    cb = c // nblk

    # TODO(synk): if used at large N, tile the M axis (multiples of 128) with a
    # reduction pass instead of one (C, N*H*W) block, to stay within VMEM.
    out2d = pl.pallas_call(
        _bn_kernel,
        out_shape=jax.ShapeDtypeStruct((c, m), jnp.float32),
        grid_spec=pltpu.PrefetchScalarGridSpec(
            num_scalar_prefetch=0,
            grid=(nblk,),
            in_specs=[
                pl.BlockSpec((cb, m), lambda i: (i, 0)),
                pl.BlockSpec((cb, 1), lambda i: (i, 0)),
                pl.BlockSpec((cb, 1), lambda i: (i, 0)),
            ],
            out_specs=pl.BlockSpec((cb, m), lambda i: (i, 0)),
        ),
        compiler_params=pltpu.CompilerParams(
            dimension_semantics=("parallel",),
        ),
    )(x2d, g2d, b2d)

    if n == 1:
        return out2d.reshape(n, c, h, w)
    return jnp.transpose(out2d.reshape(c, n, h, w), (1, 0, 2, 3))


if __name__ == "__main__":
    key = jax.random.PRNGKey(0)
    # Shape implied by the module: BatchNorm2d(256) applied to (1, 256, 14, 14).
    x = jax.random.normal(key, (1, 256, 14, 14), dtype=jnp.float32)

    # Parameters per nn.BatchNorm2d(256, affine=True) __init__: weight=1, bias=0.
    gamma = jnp.ones((256,), dtype=jnp.float32)
    beta = jnp.zeros((256,), dtype=jnp.float32)

    out = jax.block_until_ready(batchnorm2d(x, gamma, beta))

    # Reference in plain JAX (training-mode batch statistics).
    mean = jnp.mean(x, axis=(0, 2, 3), keepdims=True)
    var = jnp.mean((x - mean) ** 2, axis=(0, 2, 3), keepdims=True)
    ref = (x - mean) / jnp.sqrt(var + EPS) * gamma.reshape(1, -1, 1, 1) \
        + beta.reshape(1, -1, 1, 1)
    assert jnp.allclose(out, ref, atol=1e-4, rtol=1e-4), \
        float(jnp.max(jnp.abs(out - ref)))

    print("KERNEL_OK")
</pallas_src>

<mosaic_0001>
module attributes {stable_mosaic.version = 11 : i64} {
  func.func @_bn_kernel(%arg0: i32, %arg1: memref<256x196xf32, #tpu.memory_space<vmem>>, %arg2: memref<256x1xf32, #tpu.memory_space<vmem>>, %arg3: memref<256x1xf32, #tpu.memory_space<vmem>>, %arg4: memref<256x196xf32, #tpu.memory_space<vmem>>) attributes {dimension_semantics = [#tpu.dimension_semantics<parallel>], iteration_bounds = array<i64: 1>, scalar_prefetch = 0 : i64, scratch_operands = 0 : i64, tpu.core_type = #tpu.core_type<tc>, window_params = [{transform_indices = @transform_0, window_bounds = array<i64: 256, 196>}, {transform_indices = @transform_1, window_bounds = array<i64: 256, 1>}, {transform_indices = @transform_2, window_bounds = array<i64: 256, 1>}, {transform_indices = @transform_3, window_bounds = array<i64: 256, 196>}]} {
    %c0 = arith.constant 0 : index
    %c0_0 = arith.constant 0 : index
    %0 = vector.load %arg1[%c0, %c0_0] : memref<256x196xf32, #tpu.memory_space<vmem>>, vector<256x196xf32>
    %cst = arith.constant dense<0.000000e+00> : vector<256xf32>
    %1 = vector.multi_reduction <add>, %0, %cst [1] : vector<256x196xf32> to vector<256xf32>
    %2 = vector.shape_cast %1 : vector<256xf32> to vector<256x1xf32>
    %3 = arith.mulf %0, %0 : vector<256x196xf32>
    %cst_1 = arith.constant dense<0.000000e+00> : vector<256xf32>
    %4 = vector.multi_reduction <add>, %3, %cst_1 [1] : vector<256x196xf32> to vector<256xf32>
    %5 = vector.shape_cast %4 : vector<256xf32> to vector<256x1xf32>
    %cst_2 = arith.constant 0.00510204071 : f32
    %6 = vector.broadcast %cst_2 : f32 to vector<256x1xf32>
    %7 = arith.mulf %2, %6 : vector<256x1xf32>
    %cst_3 = arith.constant 0.00510204071 : f32
    %8 = vector.broadcast %cst_3 : f32 to vector<256x1xf32>
    %9 = arith.mulf %5, %8 : vector<256x1xf32>
    %10 = arith.mulf %7, %7 : vector<256x1xf32>
    %11 = arith.subf %9, %10 : vector<256x1xf32>
    %cst_4 = arith.constant 9.99999974E-6 : f32
    %12 = vector.broadcast %cst_4 : f32 to vector<256x1xf32>
    %13 = arith.addf %11, %12 : vector<256x1xf32>
    %14 = math.rsqrt %13 : vector<256x1xf32>
    %c0_5 = arith.constant 0 : index
    %c0_6 = arith.constant 0 : index
    %15 = vector.load %arg2[%c0_5, %c0_6] : memref<256x1xf32, #tpu.memory_space<vmem>>, vector<256x1xf32>
    %16 = arith.mulf %14, %15 : vector<256x1xf32>
    %c0_7 = arith.constant 0 : index
    %c0_8 = arith.constant 0 : index
    %17 = vector.load %arg3[%c0_7, %c0_8] : memref<256x1xf32, #tpu.memory_space<vmem>>, vector<256x1xf32>
    %18 = arith.mulf %7, %16 : vector<256x1xf32>
    %19 = arith.subf %17, %18 : vector<256x1xf32>
    %20 = vector.broadcast %16 : vector<256x1xf32> to vector<256x196xf32>
    %21 = arith.mulf %0, %20 : vector<256x196xf32>
    %22 = vector.broadcast %19 : vector<256x1xf32> to vector<256x196xf32>
    %23 = arith.addf %21, %22 : vector<256x196xf32>
    %c0_9 = arith.constant 0 : index
    %c0_10 = arith.constant 0 : index
    %24 = vector.load %arg4[%c0_9, %c0_10] : memref<256x196xf32, #tpu.memory_space<vmem>>, vector<256x196xf32>
    tpu.vector_store %arg4[%c0_9, %c0_10], %23 {strides = array<i32>} : memref<256x196xf32, #tpu.memory_space<vmem>>, vector<256x196xf32>,
    return
  }
  func.func @transform_0(%arg0: i32) -> (i32, i32) {
    %c0_i32 = arith.constant 0 : i32
    %c0_i32_0 = arith.constant 0 : i32
    return %arg0, %c0_i32 : i32, i32
  }
  func.func @transform_1(%arg0: i32) -> (i32, i32) {
    %c0_i32 = arith.constant 0 : i32
    %c0_i32_0 = arith.constant 0 : i32
    return %arg0, %c0_i32 : i32, i32
  }
  func.func @transform_2(%arg0: i32) -> (i32, i32) {
    %c0_i32 = arith.constant 0 : i32
    %c0_i32_0 = arith.constant 0 : i32
    return %arg0, %c0_i32 : i32, i32
  }
  func.func @transform_3(%arg0: i32) -> (i32, i32) {
    %c0_i32 = arith.constant 0 : i32
    %c0_i32_0 = arith.constant 0 : i32
    return %arg0, %c0_i32 : i32, i32
  }
}

</mosaic_0001>

<bundles_post_ra>
// kernel: tpu_custom_call.1
= control target key start
LH: loop header
LB: loop body
LE: loop exit
PB: predicated region body
PF: predicated region fallthrough
CT: control target
= control target key end

     0   :  { %vm78_vm0 = vcmask 556032   ;;  %s3090_s0 = inlined_call_operand.vmem [shape: f32[256,196], index: 0, kind: input, shape index: {}]   ;;  %s3091_s1 = inlined_call_operand.vmem [shape: f32[256,1], index: 1, kind: input, shape index: {}]   ;;  %s3092_s2 = inlined_call_operand.vmem [shape: f32[256,1], index: 2, kind: input, shape index: {}]   ;;  %s3093_s3 = inlined_call_operand.vmem [shape: f32[256,196], index: 3, kind: output, shape index: {}]  }
   0x1   :  { %v1422_v0 = vld [vmem:[%s3090_s0 + $0x20] sm:$0xff]  ;;  %v1427_v1 = vld [vmem:[%s3090_s0 + $0x28] sm:$0xff]  ;;  %v1444_v5 = vld [vmem:[%s3090_s0 + $0x30] sm:$0xff] }
   0x2   :  { %v1432_v2 = vld [vmem:[%s3090_s0] sm:$0xff]  ;;  %v87_v3 = vsel %vm78_vm0, %v1427_v1, 0.0  ;;  %v1439_v4 = vld [vmem:[%s3090_s0 + $0x8] sm:$0xff]  ;;  %v1449_v6 = vld [vmem:[%s3090_s0 + $0x38] sm:$0xff] }
   0x3   :  { %v88_v7 = vadd.f32 %v87_v3, %v1422_v0  ;;  %v79_v8 = vsel %vm78_vm0, %v1439_v4, 0.0  ;;  %v91_v9 = vsel %vm78_vm0, %v1449_v6, 0.0  ;;  %v1459_v10 = vld [vmem:[%s3090_s0 + $0x10] sm:$0xff]  ;;  %v1464_v11 = vld [vmem:[%s3090_s0 + $0x18] sm:$0xff]  ;;  %v1477_v15 = vld [vmem:[%s3090_s0 + $0x48] sm:$0xff] }
   0x4   :  { %v80_v12 = vadd.f32 %v79_v8, %v1432_v2  ;;  %v83_v13 = vsel %vm78_vm0, %v1464_v11, 0.0  ;;  %v1472_v14 = vld [vmem:[%s3090_s0 + $0x58] sm:$0xff]  ;;  %v92_v16 = vadd.f32 %v91_v9, %v1444_v5  ;;  %v1484_v18 = vld [vmem:[%s3090_s0 + $0x50] sm:$0xff]  ;;  %v1491_v20 = vld [vmem:[%s3090_s0 + $0x40] sm:$0xff]  ;;  %v95_v21 = vsel %vm78_vm0, %v1477_v15, 0.0 }
   0x5   :  { %89 = vadd.xlane.f32.xlu1 %v88_v7  ;;  %v84_v17 = vadd.f32 %v83_v13, %v1459_v10  ;;  %v99_v19 = vsel %vm78_vm0, %v1472_v14, 0.0  ;;  %v1498_v22 = vld [vmem:[%s3090_s0 + $0x78] sm:$0xff]  ;;  %v1503_v23 = vld [vmem:[%s3090_s0 + $0x68] sm:$0xff]  ;;  %v96_v25 = vadd.f32 %v95_v21, %v1491_v20  ;;  %v1510_v26 = vld [vmem:[%s3090_s0 + $0x70] sm:$0xff] }
   0x6   :  { %81 = vadd.xlane.f32.xlu0 %v80_v12  ;;  %v100_v24 = vadd.f32 %v99_v19, %v1484_v18  ;;  %v107_v27 = vsel %vm78_vm0, %v1498_v22, 0.0  ;;  %v1517_v28 = vld [vmem:[%s3090_s0 + $0x60] sm:$0xff]  ;;  %v103_v29 = vsel %vm78_vm0, %v1503_v23, 0.0  ;;  %v1524_v30 = vld [vmem:[%s3090_s0 + $0x98] sm:$0xff]  ;;  %v1529_v31 = vld [vmem:[%s3090_s0 + $0x88] sm:$0xff] }
   0x7   :  { %v108_v32 = vadd.f32 %v107_v27, %v1510_v26  ;;  %v104_v33 = vadd.f32 %v103_v29, %v1517_v28  ;;  %v1536_v34 = vld [vmem:[%s3090_s0 + $0x90] sm:$0xff]  ;;  %v115_v35 = vsel %vm78_vm0, %v1524_v30, 0.0  ;;  %v1543_v36 = vld [vmem:[%s3090_s0 + $0x80] sm:$0xff]  ;;  %v111_v37 = vsel %vm78_vm0, %v1529_v31, 0.0  ;;  %v1550_v38 = vld [vmem:[%s3090_s0 + $0xb8] sm:$0xff] }
   0x8   :  { %v1555_v39 = vld [vmem:[%s3090_s0 + $0xa8] sm:$0xff]  ;;  %v116_v40 = vadd.f32 %v115_v35, %v1536_v34  ;;  %v112_v41 = vadd.f32 %v111_v37, %v1543_v36  ;;  %v1562_v42 = vld [vmem:[%s3090_s0 + $0xb0] sm:$0xff]  ;;  %v123_v43 = vsel %vm78_vm0, %v1550_v38, 0.0  ;;  %v1569_v44 = vld [vmem:[%s3090_s0 + $0xa0] sm:$0xff] }
   0x9   :  { %93 = vadd.xlane.f32.xlu1 %v92_v16  ;;  %v119_v45 = vsel %vm78_vm0, %v1555_v39, 0.0  ;;  %v1576_v46 = vld [vmem:[%s3090_s0 + $0xd8] sm:$0xff]  ;;  %v1581_v47 = vld [vmem:[%s3090_s0 + $0xc8] sm:$0xff]  ;;  %v124_v48 = vadd.f32 %v123_v43, %v1562_v42  ;;  %v1588_v50 = vld [vmem:[%s3090_s0 + $0xd0] sm:$0xff] }
   0xa   :  { %85 = vadd.xlane.f32.xlu0 %v84_v17  ;;  %v120_v49 = vadd.f32 %v119_v45, %v1569_v44  ;;  %v131_v51 = vsel %vm78_vm0, %v1576_v46, 0.0  ;;  %v1595_v52 = vld [vmem:[%s3090_s0 + $0xc0] sm:$0xff]  ;;  %v127_v53 = vsel %vm78_vm0, %v1581_v47, 0.0  ;;  %v1602_v54 = vld [vmem:[%s3090_s0 + $0xf8] sm:$0xff]  ;;  %v1607_v55 = vld [vmem:[%s3090_s0 + $0xe8] sm:$0xff] }
   0xb   :  { %v132_v56 = vadd.f32 %v131_v51, %v1588_v50  ;;  %v128_v57 = vadd.f32 %v127_v53, %v1595_v52  ;;  %v1614_v58 = vld [vmem:[%s3090_s0 + $0xf0] sm:$0xff]  ;;  %v139_v59 = vsel %vm78_vm0, %v1602_v54, 0.0  ;;  %v1621_v60 = vld [vmem:[%s3090_s0 + $0xe0] sm:$0xff]  ;;  %v135_v61 = vsel %vm78_vm0, %v1607_v55, 0.0  ;;  %v1628_v62 = vld [vmem:[%s3090_s0 + $0x118] sm:$0xff] }
   0xc   :  { %v1633_v63 = vld [vmem:[%s3090_s0 + $0x108] sm:$0xff]  ;;  %v140_v3 = vadd.f32 %v139_v59, %v1614_v58  ;;  %v136_v7 = vadd.f32 %v135_v61, %v1621_v60  ;;  %v1640_v8 = vld [vmem:[%s3090_s0 + $0x110] sm:$0xff]  ;;  %v147_v9 = vsel %vm78_vm0, %v1628_v62, 0.0  ;;  %v1647_v12 = vld [vmem:[%s3090_s0 + $0x100] sm:$0xff] }
   0xd   :  { %101 = vadd.xlane.f32.xlu1 %v100_v24  ;;  %v143_v13 = vsel %vm78_vm0, %v1633_v63, 0.0  ;;  %v1654_v16 = vld [vmem:[%s3090_s0 + $0x138] sm:$0xff]  ;;  %v1659_v17 = vld [vmem:[%s3090_s0 + $0x128] sm:$0xff]  ;;  %v148_v19 = vadd.f32 %v147_v9, %v1640_v8  ;;  %v1666_v24 = vld [vmem:[%s3090_s0 + $0x130] sm:$0xff] }
   0xe   :  { %97 = vadd.xlane.f32.xlu0 %v96_v25  ;;  %v144_v21 = vadd.f32 %v143_v13, %v1647_v12  ;;  %v155_v25 = vsel %vm78_vm0, %v1654_v16, 0.0  ;;  %v1673_v27 = vld [vmem:[%s3090_s0 + $0x120] sm:$0xff]  ;;  %v151_v29 = vsel %vm78_vm0, %v1659_v17, 0.0 }
   0xf   :  { %v156_v35 = vadd.f32 %v155_v25, %v1666_v24  ;;  %v152_v37 = vadd.f32 %v151_v29, %v1673_v27  ;;  %v1699_v43 = vld [vmem:[%s3090_s0 + $0x140] sm:$0xff] }
  0x10   :  { %v1725_v59 = vld [vmem:[%s3090_s0 + $0x160] sm:$0xff] }
  0x11   :  { %109 = vadd.xlane.f32.xlu1 %v108_v32  ;;  %v1680_v32 = vld [vmem:[%s3090_s0 + $0x158] sm:$0xff]  ;;  %v1751_v25 = vld [vmem:[%s3090_s0 + $0x180] sm:$0xff] }
  0x12   :  { %105 = vadd.xlane.f32.xlu0 %v104_v33  ;;  %v1685_v33 = vld [vmem:[%s3090_s0 + $0x148] sm:$0xff]  ;;  %3119 = vst [vmem:[#allocation3_spill] sm:$0xff] %v1751_v25 }
  0x13   :  { %v159_v45 = vsel %vm78_vm0, %v1685_v33, 0.0 }
  0x14   :  { %v160_v53 = vadd.f32 %v159_v45, %v1699_v43 }
  0x15   :  { %117 = vadd.xlane.f32.xlu1 %v116_v40  ;;  %v1692_v40 = vld [vmem:[%s3090_s0 + $0x150] sm:$0xff] }
  0x16   :  { %113 = vadd.xlane.f32.xlu0 %v112_v41  ;;  %v163_v41 = vsel %vm78_vm0, %v1680_v32, 0.0 }
  0x17   :  { %v164_v51 = vadd.f32 %v163_v41, %v1692_v40 }
  0x19   :  { %125 = vadd.xlane.f32.xlu1 %v124_v48  ;;  %v1706_v48 = vld [vmem:[%s3090_s0 + $0x178] sm:$0xff] }
  0x1a   :  { %121 = vadd.xlane.f32.xlu0 %v120_v49  ;;  %v1711_v49 = vld [vmem:[%s3090_s0 + $0x168] sm:$0xff] }
  0x1b   :  { %v167_v61 = vsel %vm78_vm0, %v1711_v49, 0.0 }
  0x1c   :  { %v168_v13 = vadd.f32 %v167_v61, %v1725_v59 }
  0x1d   :  { %133 = vadd.xlane.f32.xlu1 %v132_v56  ;;  %v1718_v56 = vld [vmem:[%s3090_s0 + $0x170] sm:$0xff] }
  0x1e   :  { %129 = vadd.xlane.f32.xlu0 %v128_v57  ;;  %v171_v57 = vsel %vm78_vm0, %v1706_v48, 0.0 }
  0x1f   :  { %v172_v9 = vadd.f32 %v171_v57, %v1718_v56  ;;  %v1777_v57 = vld [vmem:[%s3090_s0 + $0x1a0] sm:$0xff] }
  0x20   :  { %3123 = vst [vmem:[#allocation7_spill] sm:$0xff] %v1777_v57 }
  0x21   :  { %141 = vadd.xlane.f32.xlu1 %v140_v3  ;;  %v1732_v3 = vld [vmem:[%s3090_s0 + $0x198] sm:$0xff] }
  0x22   :  { %137 = vadd.xlane.f32.xlu0 %v136_v7  ;;  %v1737_v7 = vld [vmem:[%s3090_s0 + $0x188] sm:$0xff] }
  0x23   :  { %v175_v29 = vsel %vm78_vm0, %v1737_v7, 0.0 }
  0x24   :  { %v176_v45 = vadd.f32 %v175_v29, %v1751_v25  ;;  %v1803_v25 = vld [vmem:[%s3090_s0 + $0x1c0] sm:$0xff] }
  0x25   :  { %149 = vadd.xlane.f32.xlu1 %v148_v19  ;;  %v1744_v19 = vld [vmem:[%s3090_s0 + $0x190] sm:$0xff]  ;;  %3127 = vst [vmem:[#allocation11_spill] sm:$0xff] %v1803_v25 }
  0x26   :  { %145 = vadd.xlane.f32.xlu0 %v144_v21  ;;  %3118 = vst [vmem:[#allocation2_spill] sm:$0xff] %v1744_v19  ;;  %v179_v21 = vsel %vm78_vm0, %v1732_v3, 0.0 }
  0x27   :  { %v180_v41 = vadd.f32 %v179_v21, %v1744_v19 }
  0x29   :  { %157 = vadd.xlane.f32.xlu1 %v156_v35  ;;  %v1758_v35 = vld [vmem:[%s3090_s0 + $0x1b8] sm:$0xff] }
  0x2a   :  { %153 = vadd.xlane.f32.xlu0 %v152_v37  ;;  %3120 = vst [vmem:[#allocation4_spill] sm:$0xff] %v1758_v35  ;;  %v1763_v37 = vld [vmem:[%s3090_s0 + $0x1a8] sm:$0xff] }
  0x2b   :  { %3121 = vst [vmem:[#allocation5_spill] sm:$0xff] %v1763_v37  ;;  %v183_v61 = vsel %vm78_vm0, %v1763_v37, 0.0  ;;  %v1796_v37 = vld [vmem:[%s3090_s0 + $0x1d0] sm:$0xff] }
  0x2c   :  { %v184_v29 = vadd.f32 %v183_v61, %v1777_v57  ;;  %3126 = vst [vmem:[#allocation10_spill] sm:$0xff] %v1796_v37 }
  0x2d   :  { %165 = vadd.xlane.f32.xlu1 %v164_v51  ;;  %v1770_v51 = vld [vmem:[%s3090_s0 + $0x1b0] sm:$0xff] }
  0x2e   :  { %161 = vadd.xlane.f32.xlu0 %v160_v53  ;;  %3122 = vst [vmem:[#allocation6_spill] sm:$0xff] %v1770_v51  ;;  %v187_v53 = vsel %vm78_vm0, %v1758_v35, 0.0 }
  0x2f   :  { %v188_v21 = vadd.f32 %v187_v53, %v1770_v51  ;;  %v1815_v53 = vld [vmem:[%s3090_s0 + $0x1e8] sm:$0xff]  ;;  %v210_v51 = vmul.f32 %v1464_v11, %v1464_v11 }
  0x30   :  { %3129 = vst [vmem:[#allocation13_spill] sm:$0xff] %v1815_v53 }
  0x31   :  { %173 = vadd.xlane.f32.xlu1 %v172_v9  ;;  %v1784_v9 = vld [vmem:[%s3090_s0 + $0x1d8] sm:$0xff] }
  0x32   :  { %169 = vadd.xlane.f32.xlu0 %v168_v13  ;;  %3124 = vst [vmem:[#allocation8_spill] sm:$0xff] %v1784_v9  ;;  %v1789_v13 = vld [vmem:[%s3090_s0 + $0x1c8] sm:$0xff]  ;;  %v195_v35 = vsel %vm78_vm0, %v1784_v9, 0.0 }
  0x33   :  { %3125 = vst [vmem:[#allocation9_spill] sm:$0xff] %v1789_v13  ;;  %v196_v61 = vadd.f32 %v195_v35, %v1796_v37  ;;  %v199_v35 = vsel %vm78_vm0, %v1815_v53, 0.0  ;;  %v207_v37 = vmul.f32 %v1432_v2, %v1432_v2  ;;  %v214_v53 = vmul.f32 %v1449_v6, %v1449_v6 }
  0x34   :  { %v211_v2 = vmul.f32 %v1422_v0, %v1422_v0  ;;  %v218_v6 = vmul.f32 %v1472_v14, %v1472_v14  ;;  %v215_v0 = vmul.f32 %v1491_v20, %v1491_v20  ;;  %v222_v14 = vmul.f32 %v1498_v22, %v1498_v22 }
  0x35   :  { %181 = vadd.xlane.f32.xlu1 %v180_v41  ;;  %v191_v41 = vsel %vm78_vm0, %v1789_v13, 0.0  ;;  %v1822_v13 = vld [vmem:[%s3090_s0 + $0x1f0] sm:$0xff]  ;;  %v219_v20 = vmul.f32 %v1517_v28, %v1517_v28  ;;  %v226_v22 = vmul.f32 %v1524_v30, %v1524_v30  ;;  %v223_v28 = vmul.f32 %v1543_v36, %v1543_v36 }
  0x36   :  { %177 = vadd.xlane.f32.xlu0 %v176_v45  ;;  %v1810_v45 = vld [vmem:[%s3090_s0 + $0x1f8] sm:$0xff]  ;;  %v192_v9 = vadd.f32 %v191_v41, %v1803_v25  ;;  %v275_v25 = vsel %vm78_vm0, %v210_v51, 0.0  ;;  %v283_v51 = vsel %vm78_vm0, %v214_v53, 0.0  ;;  %v230_v30 = vmul.f32 %v1550_v38, %v1550_v38 }
  0x37   :  { %3128 = vst [vmem:[#allocation12_spill] sm:$0xff] %v1810_v45  ;;  %v203_v57 = vsel %vm78_vm0, %v1810_v45, 0.0  ;;  %v209_v45 = vmul.f32 %v1459_v10, %v1459_v10  ;;  %v213_v10 = vmul.f32 %v1444_v5, %v1444_v5  ;;  %v217_v5 = vmul.f32 %v1484_v18, %v1484_v18 }
  0x38   :  { %v204_v41 = vadd.f32 %v203_v57, %v1822_v13  ;;  %v221_v18 = vmul.f32 %v1510_v26, %v1510_v26  ;;  %v225_v26 = vmul.f32 %v1536_v34, %v1536_v34  ;;  %v229_v34 = vmul.f32 %v1562_v42, %v1562_v42 }
  0x39   :  { %189 = vadd.xlane.f32.xlu1 %v188_v21  ;;  %v1831_v21 = vld [vmem:[%s3090_s0 + $0x1e0] sm:$0xff]  ;;  %v276_v57 = vadd.f32 %v275_v25, %v209_v45  ;;  %v284_v25 = vadd.f32 %v283_v51, %v213_v10  ;;  %v227_v36 = vmul.f32 %v1569_v44, %v1569_v44  ;;  %v234_v38 = vmul.f32 %v1576_v46, %v1576_v46 }
  0x3a   :  { %185 = vadd.xlane.f32.xlu0 %v184_v29  ;;  %v208_v29 = vmul.f32 %v1439_v4, %v1439_v4  ;;  %v200_v11 = vadd.f32 %v199_v35, %v1831_v21  ;;  %v212_v4 = vmul.f32 %v1427_v1, %v1427_v1  ;;  %v216_v1 = vmul.f32 %v1477_v15, %v1477_v15 }
  0x3b   :  { %v220_v15 = vmul.f32 %v1503_v23, %v1503_v23  ;;  %v224_v23 = vmul.f32 %v1529_v31, %v1529_v31  ;;  %v228_v31 = vmul.f32 %v1555_v39, %v1555_v39  ;;  %v232_v39 = vmul.f32 %v1581_v47, %v1581_v47 }
  0x3c   :  { %v271_v19 = vsel %vm78_vm0, %v208_v29, 0.0  ;;  %v287_v45 = vsel %vm78_vm0, %v216_v1, 0.0  ;;  %v299_v29 = vsel %vm78_vm0, %v222_v14, 0.0  ;;  %v233_v42 = vmul.f32 %v1588_v50, %v1588_v50 }
  0x3d   :  { %197 = vadd.xlane.f32.xlu1 %v196_v61  ;;  %v279_v61 = vsel %vm78_vm0, %v212_v4, 0.0  ;;  %v288_v35 = vadd.f32 %v287_v45, %v215_v0  ;;  %v303_v10 = vsel %vm78_vm0, %v224_v23, 0.0  ;;  %v231_v44 = vmul.f32 %v1595_v52, %v1595_v52 }
  0x3e   :  { %193 = vadd.xlane.f32.xlu0 %v192_v9  ;;  %v272_v9 = vadd.f32 %v271_v19, %v207_v37  ;;  %v280_v19 = vadd.f32 %v279_v61, %v211_v2  ;;  %v291_v37 = vsel %vm78_vm0, %v218_v6, 0.0  ;;  %v304_v51 = vadd.f32 %v303_v10, %v223_v28 }
  0x3f   :  { %v292_v53 = vadd.f32 %v291_v37, %v217_v5  ;;  %v315_v2 = vsel %vm78_vm0, %v230_v30, 0.0  ;;  %v311_v6 = vsel %vm78_vm0, %v228_v31, 0.0  ;;  %v238_v46 = vmul.f32 %v1602_v54, %v1602_v54 }
  0x40   :  { %v316_v61 = vadd.f32 %v315_v2, %v229_v34  ;;  %v312_v1 = vadd.f32 %v311_v6, %v227_v36  ;;  %v319_v5 = vsel %vm78_vm0, %v232_v39, 0.0  ;;  %v236_v47 = vmul.f32 %v1607_v55, %v1607_v55  ;;  %v3131_v2 = vld [vmem:[#allocation3_spill] sm:$0xff]  ;;  %v3132_v36 = vld [vmem:[#allocation4_spill] sm:$0xff]  ;;  %v3133_v6 = vld [vmem:[#allocation5_spill] sm:$0xff] }
  0x41   :  { %205 = vadd.xlane.f32.xlu1 %v204_v41  ;;  %v295_v41 = vsel %vm78_vm0, %v220_v15, 0.0  ;;  %v237_v50 = vmul.f32 %v1614_v58, %v1614_v58  ;;  %v320_v37 = vadd.f32 %v319_v5, %v231_v44  ;;  %v331_v0 = vsel %vm78_vm0, %v238_v46, 0.0  ;;  %v3135_v44 = vld [vmem:[#allocation7_spill] sm:$0xff]  ;;  %v3136_v5 = vld [vmem:[#allocation8_spill] sm:$0xff] }
  0x42   :  { %201 = vadd.xlane.f32.xlu0 %v200_v11  ;;  %v300_v11 = vadd.f32 %v299_v29, %v221_v18  ;;  %v296_v4 = vadd.f32 %v295_v41, %v219_v20  ;;  %v235_v52 = vmul.f32 %v1621_v60, %v1621_v60  ;;  %v242_v54 = vmul.f32 %v1628_v62, %v1628_v62 }
  0x43   :  { %v327_v14 = vsel %vm78_vm0, %v236_v47, 0.0  ;;  %v240_v55 = vmul.f32 %v1633_v63, %v1633_v63  ;;  %v332_v45 = vadd.f32 %v331_v0, %v237_v50  ;;  %v241_v58 = vmul.f32 %v1640_v8, %v1640_v8  ;;  %v3137_v50 = vld [vmem:[#allocation9_spill] sm:$0xff] }
  0x44   :  { %v328_v15 = vadd.f32 %v327_v14, %v235_v52  ;;  %v239_v60 = vmul.f32 %v1647_v12, %v1647_v12  ;;  %v246_v62 = vmul.f32 %v1654_v16, %v1654_v16  ;;  %v244_v63 = vmul.f32 %v1659_v17, %v1659_v17  ;;  %v3138_v52 = vld [vmem:[#allocation10_spill] sm:$0xff] }
  0x45   :  { %277 = vadd.xlane.f32.xlu1 %v276_v57  ;;  %v307_v57 = vsel %vm78_vm0, %v226_v22, 0.0  ;;  %v335_v18 = vsel %vm78_vm0, %v240_v55, 0.0  ;;  %v245_v8 = vmul.f32 %v1666_v24, %v1666_v24  ;;  %v243_v12 = vmul.f32 %v1673_v27, %v1673_v27 }
  0x46   :  { %273 = vadd.xlane.f32.xlu0 %v272_v9  ;;  %v308_v9 = vadd.f32 %v307_v57, %v225_v26  ;;  %v336_v29 = vadd.f32 %v335_v18, %v239_v60  ;;  %v347_v20 = vsel %vm78_vm0, %v246_v62, 0.0  ;;  %v250_v16 = vmul.f32 %v1680_v32, %v1680_v32  ;;  %v3141_v62 = vld [vmem:[#allocation13_spill] sm:$0xff] }
  0x47   :  { %v343_v22 = vsel %vm78_vm0, %v244_v63, 0.0  ;;  %v248_v17 = vmul.f32 %v1685_v33, %v1685_v33  ;;  %v348_v41 = vadd.f32 %v347_v20, %v245_v8  ;;  %v249_v24 = vmul.f32 %v1692_v40, %v1692_v40 }
  0x48   :  { %v344_v23 = vadd.f32 %v343_v22, %v243_v12  ;;  %v247_v27 = vmul.f32 %v1699_v43, %v1699_v43  ;;  %v254_v32 = vmul.f32 %v1706_v48, %v1706_v48  ;;  %v1398_v26 = vmov 0  }
  0x49   :  { %285 = vadd.xlane.f32.xlu1 %v284_v25  ;;  %v323_v25 = vsel %vm78_vm0, %v234_v38, 0.0  ;;  %v252_v33 = vmul.f32 %v1711_v49, %v1711_v49  ;;  %1268 = vset.pattern.permute.xlu0 %v1398_v26  ;;  %v253_v57 = vmul.f32 %v1718_v56, %v1718_v56  ;;  %v251_v48 = vmul.f32 %v1725_v59, %v1725_v59 }
  0x4a   :  { %281 = vadd.xlane.f32.xlu0 %v280_v19  ;;  %v324_v19 = vadd.f32 %v323_v25, %v233_v42  ;;  %1269 = vset.pattern.permute.xlu1 %v1398_v26  ;;  %v363_v43 = vsel %vm78_vm0, %v254_v32, 0.0  ;;  %v258_v30 = vmul.f32 %v1732_v3, %v1732_v3  ;;  %v256_v49 = vmul.f32 %v1737_v7, %v1737_v7 }
  0x4b   :  { %v359_v10 = vsel %vm78_vm0, %v252_v33, 0.0  ;;  %v364_v31 = vadd.f32 %v363_v43, %v253_v57  ;;  %v255_v59 = vmul.f32 %v3131_v2, %v3131_v2  ;;  %v262_v3 = vmul.f32 %v3132_v36, %v3132_v36 }
  0x4c   :  { %v360_v34 = vadd.f32 %v359_v10, %v251_v48  ;;  %v367_v38 = vsel %vm78_vm0, %v256_v49, 0.0  ;;  %v260_v7 = vmul.f32 %v3133_v6, %v3133_v6  ;;  %v259_v46 = vmul.f32 %v3135_v44, %v3135_v44 }
  0x4d   :  { %293 = vadd.xlane.f32.xlu1 %v292_v53  ;;  %v339_v53 = vsel %vm78_vm0, %v242_v54, 0.0  ;;  %v379_v25 = vsel %vm78_vm0, %v262_v3, 0.0  ;;  %v266_v47 = vmul.f32 %v3136_v5, %v3136_v5  ;;  %v265_v54 = vmul.f32 %v3138_v52, %v3138_v52 }
  0x4e   :  { %289 = vadd.xlane.f32.xlu0 %v288_v35  ;;  %v340_v35 = vadd.f32 %v339_v53, %v241_v58  ;;  %v268_v18 = vmul.f32 %v3141_v62, %v3141_v62  ;;  %v267_v20 = vmul.f32 %v1831_v21, %v1831_v21 }
  0x4f   :  { %v387_v55 = vsel %vm78_vm0, %v266_v47, 0.0 }
  0x50   :  { %v388_v63 = vadd.f32 %v387_v55, %v265_v54  ;;  %v391_v12 = vsel %vm78_vm0, %v268_v18, 0.0 }
  0x51   :  { %301 = vadd.xlane.f32.xlu1 %v300_v11  ;;  %v355_v11 = vsel %vm78_vm0, %v250_v16, 0.0  ;;  %v392_v22 = vadd.f32 %v391_v12, %v267_v20 }
  0x52   :  { %297 = vadd.xlane.f32.xlu0 %v296_v4  ;;  %v351_v4 = vsel %vm78_vm0, %v248_v17, 0.0  ;;  %v356_v40 = vadd.f32 %v355_v11, %v249_v24 }
  0x53   :  { %v352_v28 = vadd.f32 %v351_v4, %v247_v27 }
  0x55   :  { %309 = vadd.xlane.f32.xlu1 %v308_v9  ;;  %v3130_v9 = vld [vmem:[#allocation2_spill] sm:$0xff] }
  0x56   :  { %305 = vadd.xlane.f32.xlu0 %v304_v51  ;;  %v257_v56 = vmul.f32 %v3130_v9, %v3130_v9  ;;  %v371_v51 = vsel %vm78_vm0, %v258_v30, 0.0 }
  0x58   :  { %v372_v39 = vadd.f32 %v371_v51, %v257_v56 }
  0x59   :  { %317 = vadd.xlane.f32.xlu1 %v316_v61  ;;  %v3134_v61 = vld [vmem:[#allocation6_spill] sm:$0xff] }
  0x5a   :  { %313 = vadd.xlane.f32.xlu0 %v312_v1  ;;  %v261_v42 = vmul.f32 %v3134_v61, %v3134_v61  ;;  %v368_v1 = vadd.f32 %v367_v38, %v255_v59 }
  0x5c   :  { %v380_v0 = vadd.f32 %v379_v25, %v261_v42 }
  0x5d   :  { %325 = vadd.xlane.f32.xlu1 %v324_v19  ;;  %v375_v19 = vsel %vm78_vm0, %v260_v7, 0.0 }
  0x5e   :  { %321 = vadd.xlane.f32.xlu0 %v320_v37  ;;  %v264_v37 = vmul.f32 %v3137_v50, %v3137_v50  ;;  %v376_v14 = vadd.f32 %v375_v19, %v259_v46 }
  0x60   :  { %v383_v60 = vsel %vm78_vm0, %v264_v37, 0.0 }
  0x61   :  { %333 = vadd.xlane.f32.xlu1 %v332_v45  ;;  %v3139_v45 = vld [vmem:[#allocation11_spill] sm:$0xff] }
  0x62   :  { %329 = vadd.xlane.f32.xlu0 %v328_v15  ;;  %v263_v58 = vmul.f32 %v3139_v45, %v3139_v45  ;;  %v3140_v15 = vld [vmem:[#allocation12_spill] sm:$0xff] }
  0x63   :  { %v270_v53 = vmul.f32 %v3140_v15, %v3140_v15 }
  0x64   :  { %v384_v8 = vadd.f32 %v383_v60, %v263_v58 }
  0x65   :  { %341 = vadd.xlane.f32.xlu1 %v340_v35  ;;  %v269_v35 = vmul.f32 %v1822_v13, %v1822_v13 }
  0x66   :  { %337 = vadd.xlane.f32.xlu0 %v336_v29  ;;  %v395_v29 = vsel %vm78_vm0, %v270_v53, 0.0 }
  0x67   :  { %v396_v16 = vadd.f32 %v395_v29, %v269_v35 }
  0x69   :  { %349 = vadd.xlane.f32.xlu1 %v348_v41 }
  0x6a   :  { %345 = vadd.xlane.f32.xlu0 %v344_v23 }
  0x6d   :  { %357 = vadd.xlane.f32.xlu1 %v356_v40 }
  0x6e   :  { %353 = vadd.xlane.f32.xlu0 %v352_v28 }
  0x71   :  { %365 = vadd.xlane.f32.xlu1 %v364_v31 }
  0x72   :  { %361 = vadd.xlane.f32.xlu0 %v360_v34 }
  0x75   :  { %373 = vadd.xlane.f32.xlu1 %v372_v39 }
  0x76   :  { %369 = vadd.xlane.f32.xlu0 %v368_v1 }
  0x79   :  { %381 = vadd.xlane.f32.xlu1 %v380_v0 }
  0x7a   :  { %377 = vadd.xlane.f32.xlu0 %v376_v14 }
  0x7d   :  { %389 = vadd.xlane.f32.xlu1 %v388_v63 }
  0x7e   :  { %385 = vadd.xlane.f32.xlu0 %v384_v8 }
  0x81   :  { %397 = vadd.xlane.f32.xlu1 %v396_v16 }
  0x82   :  { %393 = vadd.xlane.f32.xlu0 %v392_v22 }
  0x92   :  { %v90_v17 = vpop.xlane.xlu1 %89 }
  0x93   :  { %v82_v41 = vpop.xlane.xlu0 %81  ;;  %v2051_v5 = vmul.f32 0.0051020407, %v90_v17 }
  0x94   :  { %v2045_v61 = vmul.f32 0.0051020407, %v82_v41 }
  0x95   :  { %v465_v45 = vmul.f32 %v2051_v5, %v2051_v5 }
  0x96   :  { %v94_v24 = vpop.xlane.xlu1 %93  ;;  %v463_v47 = vmul.f32 %v2045_v61, %v2045_v61 }
  0x97   :  { %v86_v23 = vpop.xlane.xlu0 %85  ;;  %v2047_v1 = vmul.f32 0.0051020407, %v94_v24 }
  0x98   :  { %v2041_v7 = vmul.f32 0.0051020407, %v86_v23 }
  0x99   :  { %v466_v52 = vmul.f32 %v2047_v1, %v2047_v1 }
  0x9a   :  { %v102_v13 = vpop.xlane.xlu1 %101  ;;  %v464_v25 = vmul.f32 %v2041_v7, %v2041_v7 }
  0x9b   :  { %v98_v11 = vpop.xlane.xlu0 %97  ;;  %v2061_v60 = vmul.f32 0.0051020407, %v102_v13 }
  0x9c   :  { %v2059_v58 = vmul.f32 0.0051020407, %v98_v11 }
  0x9d   :  { %v468_v22 = vmul.f32 %v2061_v60, %v2061_v60 }
  0x9e   :  { %v1995_v27 = vpop.xlane.xlu1 %109  ;;  %v467_v29 = vmul.f32 %v2059_v58, %v2059_v58 }
  0x9f   :  { %v106_v32 = vpop.xlane.xlu0 %105 }
  0xa0   :  { %v2067_v17 = vmul.f32 0.0051020407, %v106_v32 }
  0xa2   :  { %v118_v26 = vpop.xlane.xlu1 %117  ;;  %v469_v32 = vmul.f32 %v2067_v17, %v2067_v17 }
  0xa3   :  { %v1997_v4 = vpop.xlane.xlu0 %113  ;;  %v2069_v23 = vmul.f32 0.0051020407, %v118_v26  ;;  %v591_v26 = vld [vmem:[%s3091_s1] sm:$0xff] }
  0xa6   :  { %v1999_v21 = vpop.xlane.xlu1 %125 }
  0xa7   :  { %v2001_v33 = vpop.xlane.xlu0 %121 }
  0xaa   :  { %v2003_v40 = vpop.xlane.xlu1 %133 }
  0xab   :  { %v2005_v57 = vpop.xlane.xlu0 %129 }
  0xae   :  { %v2007_v28 = vpop.xlane.xlu1 %141 }
  0xaf   :  { %v2009_v43 = vpop.xlane.xlu0 %137 }
  0xb2   :  { %v2011_v48 = vpop.xlane.xlu1 %149 }
  0xb3   :  { %v2013_v30 = vpop.xlane.xlu0 %145 }
  0xb6   :  { %v2015_v10 = vpop.xlane.xlu1 %157 }
  0xb7   :  { %v2017_v49 = vpop.xlane.xlu0 %153 }
  0xba   :  { %v2019_v31 = vpop.xlane.xlu1 %165 }
  0xbb   :  { %v2021_v9 = vpop.xlane.xlu0 %161 }
  0xbe   :  { %v2023_v56 = vpop.xlane.xlu1 %173 }
  0xbf   :  { %v2025_v34 = vpop.xlane.xlu0 %169 }
  0xc2   :  { %v2027_v51 = vpop.xlane.xlu1 %181 }
  0xc3   :  { %v2029_v2 = vpop.xlane.xlu0 %177 }
  0xc6   :  { %v2031_v59 = vpop.xlane.xlu1 %189 }
  0xc7   :  { %v2033_v36 = vpop.xlane.xlu0 %185 }
  0xca   :  { %v2035_v3 = vpop.xlane.xlu1 %197 }
  0xcb   :  { %v2037_v38 = vpop.xlane.xlu0 %193 }
  0xce   :  { %v2039_v6 = vpop.xlane.xlu1 %205 }
  0xcf   :  { %v2043_v39 = vpop.xlane.xlu0 %201 }
  0xd2   :  { %v278_v42 = vpop.xlane.xlu1 %277 }
  0xd3   :  { %v432_v44 = vmul.f32 0.0051020407, %v278_v42  ;;  %v274_v46 = vpop.xlane.xlu0 %273 }
  0xd4   :  { %v431_v19 = vmul.f32 0.0051020407, %v274_v46  ;;  %v2075_v46 = vmul.f32 0.0051020407, %v1995_v27 }
  0xd5   :  { %v496_v50 = vsub.f32 %v432_v44, %v464_v25  ;;  %v592_v44 = vld [vmem:[%s3091_s1 + $0x8] sm:$0xff] }
  0xd6   :  { %v495_v37 = vsub.f32 %v431_v19, %v463_v47  ;;  %v286_v0 = vpop.xlane.xlu1 %285 }
  0xd7   :  { %v528_v54 = vadd.f32 1e-05, %v496_v50  ;;  %v434_v14 = vmul.f32 0.0051020407, %v286_v0  ;;  %v282_v55 = vpop.xlane.xlu0 %281  ;;  %v472_v50 = vmul.f32 %v2069_v23, %v2069_v23 }
  0xd8   :  { %v527_v15 = vadd.f32 1e-05, %v495_v37  ;;  %v433_v53 = vmul.f32 0.0051020407, %v282_v55  ;;  %v2085_v37 = vmul.f32 0.0051020407, %v1999_v21 }
  0xd9   :  { %1270 = vrsqrt.f32 %v528_v54  ;;  %v498_v62 = vsub.f32 %v434_v14, %v466_v52 }
  0xda   :  { %1272 = vrsqrt.f32 %v527_v15  ;;  %v497_v18 = vsub.f32 %v433_v53, %v465_v45  ;;  %v294_v63 = vpop.xlane.xlu1 %293 }
  0xdb   :  { %v436_v35 = vmul.f32 0.0051020407, %v294_v63  ;;  %v290_v8 = vpop.xlane.xlu0 %289  ;;  %v530_v20 = vadd.f32 1e-05, %v498_v62  ;;  %v470_v62 = vmul.f32 %v2075_v46, %v2075_v46  ;;  %v593_v63 = vld [vmem:[%s3091_s1 + $0x10] sm:$0xff] }
  0xdc   :  { %v529_v12 = vadd.f32 1e-05, %v497_v18  ;;  %v435_v16 = vmul.f32 0.0051020407, %v290_v8  ;;  %v2094_v18 = vmul.f32 0.0051020407, %v1997_v4 }
  0xdd   :  { %v500_v13 = vsub.f32 %v436_v35, %v468_v22  ;;  %v474_v35 = vmul.f32 %v2085_v37, %v2085_v37  ;;  %v2103_v8 = vmul.f32 0.0051020407, %v2003_v40  ;;  %v2111_v40 = vmul.f32 0.0051020407, %v2001_v33 }
  0xde   :  { %1274 = vrsqrt.f32 %v529_v12  ;;  %v499_v41 = vsub.f32 %v435_v16, %v467_v29  ;;  %v302_v24 = vpop.xlane.xlu1 %301 }
  0xdf   :  { %v298_v11 = vpop.xlane.xlu0 %297  ;;  %1276 = vrsqrt.f32 %v530_v20  ;;  %v532_v0 = vadd.f32 1e-05, %v500_v13  ;;  %v438_v14 = vmul.f32 0.0051020407, %v302_v24 }
  0xe0   :  { %v531_v42 = vadd.f32 1e-05, %v499_v41  ;;  %v437_v25 = vmul.f32 0.0051020407, %v298_v11 }
  0xe1   :  { %v502_v16 = vsub.f32 %v438_v14, %v470_v62 }
  0xe2   :  { %v310_v47 = vpop.xlane.xlu1 %309  ;;  %1278 = vrsqrt.f32 %v531_v42  ;;  %v501_v55 = vsub.f32 %v437_v25, %v469_v32  ;;  %v471_v42 = vmul.f32 %v2094_v18, %v2094_v18  ;;  %v476_v32 = vmul.f32 %v2103_v8, %v2103_v8 }
  0xe3   :  { %v1271_v19 = vpop.eup %1270  ;;  %v440_v52 = vmul.f32 0.0051020407, %v310_v47  ;;  %v306_v54 = vpop.xlane.xlu0 %305  ;;  %1280 = vrsqrt.f32 %v532_v0  ;;  %v2119_v47 = vmul.f32 0.0051020407, %v2007_v28  ;;  %v534_v0 = vadd.f32 1e-05, %v502_v16 }
  0xe4   :  { %v1273_v27 = vpop.eup %1272  ;;  %v2087_v45 = vmul.f32 %v1271_v19, %v592_v44  ;;  %v533_v22 = vadd.f32 1e-05, %v501_v55  ;;  %v439_v41 = vmul.f32 0.0051020407, %v306_v54  ;;  %v594_v44 = vld [vmem:[%s3091_s1 + $0x18] sm:$0xff]  ;;  %v473_v28 = vmul.f32 %v2111_v40, %v2111_v40 }
  0xe5   :  { %v504_v15 = vsub.f32 %v440_v52, %v472_v50  ;;  %v2089_v53 = vmul.f32 %v1273_v27, %v591_v26  ;;  %v2123_v54 = vmul.f32 0.0051020407, %v2005_v57  ;;  %v478_v57 = vmul.f32 %v2119_v47, %v2119_v47 }
  0xe6   :  { %v318_v21 = vpop.xlane.xlu1 %317  ;;  %758 = vperm.xlu1 %1269, %v2087_v45   ;;  %v503_v33 = vsub.f32 %v439_v41, %v471_v42  ;;  %v600_v41 = vld [vmem:[%s3091_s1 + $0x48] sm:$0xff] }
  0xe7   :  { %v536_v29 = vadd.f32 1e-05, %v504_v15  ;;  %v442_v20 = vmul.f32 0.0051020407, %v318_v21  ;;  %753 = vperm.xlu0 %1268, %v2089_v53   ;;  %v314_v12 = vpop.xlane.xlu0 %313  ;;  %v2130_v15 = vmul.f32 0.0051020407, %v2011_v48  ;;  %v475_v48 = vmul.f32 %v2123_v54, %v2123_v54 }
  0xe8   :  { %v1275_v4 = vpop.eup %1274  ;;  %v441_v52 = vmul.f32 0.0051020407, %v314_v12  ;;  %v595_v21 = vld [vmem:[%s3091_s1 + $0x20] sm:$0xff]  ;;  %v535_v12 = vadd.f32 1e-05, %v503_v33 }
  0xe9   :  { %1282 = vrsqrt.f32 %v536_v29  ;;  %v506_v24 = vsub.f32 %v442_v20, %v474_v35  ;;  %v2106_v13 = vmul.f32 %v1275_v4, %v593_v63  ;;  %v1277_v11 = vpop.eup %1276  ;;  %v480_v42 = vmul.f32 %v2130_v15, %v2130_v15 }
  0xea   :  { %v326_v25 = vpop.xlane.xlu1 %325  ;;  %1284 = vrsqrt.f32 %v533_v22  ;;  %v2125_v14 = vmul.f32 %v1277_v11, %v594_v44  ;;  %v505_v4 = vsub.f32 %v441_v52, %v473_v28  ;;  %v2146_v11 = vmul.f32 0.0051020407, %v2009_v43  ;;  %v596_v44 = vld [vmem:[%s3091_s1 + $0x28] sm:$0xff] }
  0xeb   :  { %v538_v26 = vadd.f32 1e-05, %v506_v24  ;;  %v444_v19 = vmul.f32 0.0051020407, %v326_v25  ;;  %763 = vperm.xlu1 %1269, %v2106_v13   ;;  %v322_v50 = vpop.xlane.xlu0 %321 }
  0xec   :  { %v1279_v55 = vpop.eup %1278  ;;  %v443_v35 = vmul.f32 0.0051020407, %v322_v50  ;;  %v537_v43 = vadd.f32 1e-05, %v505_v4 }
  0xed   :  { %1286 = vrsqrt.f32 %v538_v26  ;;  %v508_v27 = vsub.f32 %v444_v19, %v476_v32  ;;  %v2140_v22 = vmul.f32 %v1279_v55, %v595_v21  ;;  %v1281_v24 = vpop.eup %1280  ;;  %v2154_v26 = vmul.f32 0.0051020407, %v2015_v10  ;;  %v602_v10 = vld [vmem:[%s3091_s1 + $0x58] sm:$0xff] }
  0xee   :  { %v334_v62 = vpop.xlane.xlu1 %333  ;;  %1288 = vrsqrt.f32 %v534_v0  ;;  %v507_v19 = vsub.f32 %v443_v35, %v475_v48  ;;  %v2159_v28 = vmul.f32 %v1281_v24, %v596_v44  ;;  %v477_v21 = vmul.f32 %v2146_v11, %v2146_v11  ;;  %v604_v44 = vld [vmem:[%s3091_s1 + $0x68] sm:$0xff] }
  0xef   :  { %v540_v63 = vadd.f32 1e-05, %v508_v27  ;;  %v446_v29 = vmul.f32 0.0051020407, %v334_v62  ;;  %768 = vperm.xlu1 %1269, %v2125_v14   ;;  %v330_v20 = vpop.xlane.xlu0 %329 }
  0xf0   :  { %v445_v52 = vmul.f32 0.0051020407, %v330_v20  ;;  %v539_v4 = vadd.f32 1e-05, %v507_v19 }
  0xf1   :  { %1290 = vrsqrt.f32 %v540_v63  ;;  %v510_v16 = vsub.f32 %v446_v29, %v478_v57  ;;  %v2167_v57 = vmul.f32 0.0051020407, %v2013_v30  ;;  %v2170_v63 = vmul.f32 0.0051020407, %v2019_v31  ;;  %v597_v29 = vld [vmem:[%s3091_s1 + $0x30] sm:$0xff] }
  0xf2   :  { %v342_v25 = vpop.xlane.xlu1 %341  ;;  %1292 = vrsqrt.f32 %v535_v12  ;;  %v482_v12 = vmul.f32 %v2154_v26, %v2154_v26  ;;  %v509_v31 = vsub.f32 %v445_v52, %v477_v21 }
  0xf3   :  { %v1283_v32 = vpop.eup %1282  ;;  %v542_v50 = vadd.f32 1e-05, %v510_v16  ;;  %v448_v0 = vmul.f32 0.0051020407, %v342_v25  ;;  %773 = vperm.xlu1 %1269, %v2140_v22   ;;  %v338_v33 = vpop.xlane.xlu0 %337  ;;  %3142 = vst [vmem:[#allocation2_spill] sm:$0xff] %v2167_v57  ;;  %v479_v19 = vmul.f32 %v2167_v57, %v2167_v57 }
  0xf4   :  { %v2157_v27 = vmul.f32 %v1283_v32, %v600_v41  ;;  %v1285_v62 = vpop.eup %1284  ;;  %v447_v41 = vmul.f32 0.0051020407, %v338_v33  ;;  %v541_v21 = vadd.f32 1e-05, %v509_v31  ;;  %v2214_v31 = vmul.f32 0.0051020407, %v2025_v34 }
  0xf5   :  { %1294 = vrsqrt.f32 %v542_v50  ;;  %v512_v55 = vsub.f32 %v448_v0, %v480_v42  ;;  %v2181_v25 = vmul.f32 %v1285_v62, %v597_v29  ;;  %v2189_v50 = vmul.f32 0.0051020407, %v2017_v49 }
  0xf6   :  { %v350_v35 = vpop.xlane.xlu1 %349  ;;  %798 = vperm.xlu0 %1268, %v2157_v27   ;;  %1296 = vrsqrt.f32 %v537_v43  ;;  %v484_v0 = vmul.f32 %v2170_v63, %v2170_v63  ;;  %v598_v43 = vld [vmem:[%s3091_s1 + $0x38] sm:$0xff]  ;;  %3146 = vst [vmem:[#allocation6_spill] sm:$0xff] %v2214_v31 }
  0xf7   :  { %v1287_v20 = vpop.eup %1286  ;;  %v544_v48 = vadd.f32 1e-05, %v512_v55  ;;  %v450_v16 = vmul.f32 0.0051020407, %v350_v35  ;;  %778 = vperm.xlu1 %1269, %v2159_v28   ;;  %v346_v30 = vpop.xlane.xlu0 %345  ;;  %3143 = vst [vmem:[#allocation3_spill] sm:$0xff] %v2189_v50  ;;  %v511_v35 = vsub.f32 %v447_v41, %v479_v19  ;;  %v599_v41 = vld [vmem:[%s3091_s1 + $0x40] sm:$0xff] }
  0xf8   :  { %v2179_v24 = vmul.f32 %v1287_v20, %v602_v10  ;;  %v1289_v32 = vpop.eup %1288  ;;  %v2198_v55 = vmul.f32 0.0051020407, %v2023_v56  ;;  %v449_v29 = vmul.f32 0.0051020407, %v346_v30  ;;  %v606_v56 = vld [vmem:[%s3091_s1 + $0x78] sm:$0xff] }
  0xf9   :  { %1298 = vrsqrt.f32 %v544_v48  ;;  %v514_v42 = vsub.f32 %v450_v16, %v482_v12  ;;  %v2204_v12 = vmul.f32 0.0051020407, %v2021_v9  ;;  %v2206_v16 = vmul.f32 %v1289_v32, %v598_v43 }
  0xfa   :  { %v358_v33 = vpop.xlane.xlu1 %357  ;;  %808 = vperm.xlu0 %1268, %v2179_v24   ;;  %3144 = vst [vmem:[#allocation4_spill] sm:$0xff] %v2198_v55  ;;  %1300 = vrsqrt.f32 %v539_v4  ;;  %v2217_v30 = vmul.f32 0.0051020407, %v2027_v51  ;;  %v486_v32 = vmul.f32 %v2198_v55, %v2198_v55  ;;  %v543_v51 = vadd.f32 1e-05, %v511_v35 }
  0xfb   :  { %v1291_v52 = vpop.eup %1290  ;;  %v546_v10 = vadd.f32 1e-05, %v514_v42  ;;  %v452_v62 = vmul.f32 0.0051020407, %v358_v33  ;;  %783 = vperm.xlu1 %1269, %v2181_v25   ;;  %v354_v49 = vpop.xlane.xlu0 %353  ;;  %3145 = vst [vmem:[#allocation5_spill] sm:$0xff] %v2204_v12  ;;  %v481_v42 = vmul.f32 %v2189_v50, %v2189_v50 }
  0xfc   :  { %v2201_v20 = vmul.f32 %v1291_v52, %v604_v44  ;;  %v1293_v4 = vpop.eup %1292  ;;  %3147 = vst [vmem:[#allocation7_spill] sm:$0xff] %v2217_v30  ;;  %v488_v35 = vmul.f32 %v2217_v30, %v2217_v30  ;;  %v2256_v30 = vmul.f32 0.0051020407, %v2035_v3  ;;  %v2270_v3 = vmul.f32 0.0051020407, %v2037_v38 }
  0xfd   :  { %1302 = vrsqrt.f32 %v546_v10  ;;  %v516_v48 = vsub.f32 %v452_v62, %v484_v0  ;;  %v451_v0 = vmul.f32 0.0051020407, %v354_v49  ;;  %v513_v43 = vsub.f32 %v449_v29, %v481_v42  ;;  %v608_v49 = vld [vmem:[%s3091_s1 + $0x88] sm:$0xff] }
  0xfe   :  { %v366_v9 = vpop.xlane.xlu1 %365  ;;  %818 = vperm.xlu0 %1268, %v2201_v20   ;;  %1304 = vrsqrt.f32 %v541_v21  ;;  %v483_v10 = vmul.f32 %v2204_v12, %v2204_v12  ;;  %v2230_v50 = vmul.f32 %v1293_v4, %v599_v41  ;;  %v2241_v29 = vmul.f32 0.0051020407, %v2029_v2  ;;  %3150 = vst [vmem:[#allocation10_spill] sm:$0xff] %v2256_v30 }
  0xff   :  { %v1295_v44 = vpop.eup %1294  ;;  %v548_v19 = vadd.f32 1e-05, %v516_v48  ;;  %v454_v33 = vmul.f32 0.0051020407, %v366_v9  ;;  %788 = vperm.xlu1 %1269, %v2206_v16   ;;  %v362_v34 = vpop.xlane.xlu0 %361  ;;  %v601_v48 = vld [vmem:[%s3091_s1 + $0x50] sm:$0xff]  ;;  %v485_v2 = vmul.f32 %v2214_v31, %v2214_v31  ;;  %v492_v31 = vmul.f32 %v2256_v30, %v2256_v30  ;;  %v614_v30 = vld [vmem:[%s3091_s1 + $0xb8] sm:$0xff] }
 0x100   :  { %v2226_v52 = vmul.f32 %v1295_v44, %v606_v56  ;;  %v1297_v21 = vpop.eup %1296  ;;  %3148 = vst [vmem:[#allocation8_spill] sm:$0xff] %v2241_v29  ;;  %v2244_v56 = vmul.f32 0.0051020407, %v2031_v59  ;;  %v2247_v4 = vmul.f32 0.0051020407, %v2033_v36  ;;  %v515_v41 = vsub.f32 %v451_v0, %v483_v10 }
 0x101   :  { %1306 = vrsqrt.f32 %v548_v19  ;;  %v518_v62 = vsub.f32 %v454_v33, %v486_v32  ;;  %v453_v32 = vmul.f32 0.0051020407, %v362_v34  ;;  %v545_v59 = vadd.f32 1e-05, %v513_v43  ;;  %v610_v34 = vld [vmem:[%s3091_s1 + $0x98] sm:$0xff] }
 0x102   :  { %3149 = vst [vmem:[#allocation9_spill] sm:$0xff] %v2244_v56  ;;  %v374_v42 = vpop.xlane.xlu1 %373  ;;  %828 = vperm.xlu0 %1268, %v2226_v52   ;;  %1308 = vrsqrt.f32 %v543_v51  ;;  %v2258_v0 = vmul.f32 %v1297_v21, %v601_v48  ;;  %v487_v10 = vmul.f32 %v2241_v29, %v2241_v29  ;;  %v490_v51 = vmul.f32 %v2244_v56, %v2244_v56 }
 0x103   :  { %v1299_v9 = vpop.eup %1298  ;;  %v550_v44 = vadd.f32 1e-05, %v518_v62  ;;  %v456_v19 = vmul.f32 0.0051020407, %v374_v42  ;;  %793 = vperm.xlu1 %1269, %v2230_v50   ;;  %v370_v33 = vpop.xlane.xlu0 %369  ;;  %v489_v43 = vmul.f32 %v2247_v4, %v2247_v4  ;;  %v547_v21 = vadd.f32 1e-05, %v515_v41 }
 0x104   :  { %v2253_v12 = vmul.f32 %v1299_v9, %v608_v49  ;;  %v1301_v36 = vpop.eup %1300  ;;  %v603_v49 = vld [vmem:[%s3091_s1 + $0x60] sm:$0xff] }
 0x105   :  { %1310 = vrsqrt.f32 %v550_v44  ;;  %v520_v57 = vsub.f32 %v456_v19, %v488_v35  ;;  %v517_v35 = vsub.f32 %v453_v32, %v485_v2  ;;  %v455_v19 = vmul.f32 0.0051020407, %v370_v33 }
 0x106   :  { %v382_v62 = vpop.xlane.xlu1 %381  ;;  %838 = vperm.xlu0 %1268, %v2253_v12   ;;  %1312 = vrsqrt.f32 %v545_v59  ;;  %v2281_v55 = vmul.f32 %v1301_v36, %v603_v49  ;;  %v491_v32 = vmul.f32 %v2270_v3, %v2270_v3  ;;  %v2289_v33 = vmul.f32 0.0051020407, %v2039_v6  ;;  %v605_v36 = vld [vmem:[%s3091_s1 + $0x70] sm:$0xff] }
 0x107   :  { %v1303_v48 = vpop.eup %1302  ;;  %v552_v42 = vadd.f32 1e-05, %v520_v57  ;;  %v458_v9 = vmul.f32 0.0051020407, %v382_v62  ;;  %803 = vperm.xlu1 %1269, %v2258_v0   ;;  %v378_v44 = vpop.xlane.xlu0 %377  ;;  %v612_v57 = vld [vmem:[%s3091_s1 + $0xa8] sm:$0xff] }
 0x108   :  { %v457_v29 = vmul.f32 0.0051020407, %v378_v44  ;;  %v2277_v38 = vmul.f32 %v1303_v48, %v610_v34  ;;  %v1305_v41 = vpop.eup %1304  ;;  %3151 = vst [vmem:[#allocation11_spill] sm:$0xff] %v2289_v33  ;;  %v2292_v2 = vmul.f32 0.0051020407, %v2043_v39 }
 0x109   :  { %1314 = vrsqrt.f32 %v552_v42  ;;  %v522_v56 = vsub.f32 %v458_v9, %v490_v51  ;;  %v549_v62 = vadd.f32 1e-05, %v517_v35  ;;  %v519_v42 = vsub.f32 %v455_v19, %v487_v10  ;;  %v607_v10 = vld [vmem:[%s3091_s1 + $0x80] sm:$0xff] }
 0x10a   :  { %v521_v59 = vsub.f32 %v457_v29, %v489_v43  ;;  %v390_v34 = vpop.xlane.xlu1 %389  ;;  %848 = vperm.xlu0 %1268, %v2277_v38   ;;  %1316 = vrsqrt.f32 %v547_v21  ;;  %v2301_v43 = vmul.f32 %v1305_v41, %v605_v36  ;;  %v493_v19 = vmul.f32 %v2292_v2, %v2292_v2 }
 0x10b   :  { %v1307_v51 = vpop.eup %1306  ;;  %v554_v49 = vadd.f32 1e-05, %v522_v56  ;;  %v460_v48 = vmul.f32 0.0051020407, %v390_v34  ;;  %813 = vperm.xlu1 %1269, %v2281_v55   ;;  %v386_v6 = vpop.xlane.xlu0 %385  ;;  %v494_v56 = vmul.f32 %v2289_v33, %v2289_v33  ;;  %v551_v36 = vadd.f32 1e-05, %v519_v42 }
 0x10c   :  { %v553_v9 = vadd.f32 1e-05, %v521_v59  ;;  %v459_v39 = vmul.f32 0.0051020407, %v386_v6  ;;  %v2299_v44 = vmul.f32 %v1307_v51, %v612_v57  ;;  %v1309_v21 = vpop.eup %1308  ;;  %v609_v42 = vld [vmem:[%s3091_s1 + $0x90] sm:$0xff] }
 0x10d   :  { %1318 = vrsqrt.f32 %v554_v49  ;;  %v524_v29 = vsub.f32 %v460_v48, %v492_v31  ;;  %v2317_v6 = vmul.f32 %v1309_v21, %v607_v10  ;;  %v618_v10 = vld [vmem:[%s3091_s1 + $0xd8] sm:$0xff] }
 0x10e   :  { %1320 = vrsqrt.f32 %v553_v9  ;;  %v523_v35 = vsub.f32 %v459_v39, %v491_v32  ;;  %v398_v34 = vpop.xlane.xlu1 %397  ;;  %858 = vperm.xlu0 %1268, %v2299_v44   ;;  %v616_v9 = vld [vmem:[%s3091_s1 + $0xc8] sm:$0xff] }
 0x10f   :  { %v1311_v31 = vpop.eup %1310  ;;  %1322 = vrsqrt.f32 %v549_v62  ;;  %v556_v57 = vadd.f32 1e-05, %v524_v29  ;;  %v462_v41 = vmul.f32 0.0051020407, %v398_v34  ;;  %823 = vperm.xlu1 %1269, %v2301_v43   ;;  %v394_v59 = vpop.xlane.xlu0 %393 }
 0x110   :  { %v555_v51 = vadd.f32 1e-05, %v523_v35  ;;  %v461_v32 = vmul.f32 0.0051020407, %v394_v59  ;;  %v2315_v49 = vmul.f32 %v1311_v31, %v614_v30  ;;  %v1313_v39 = vpop.eup %1312  ;;  %v611_v31 = vld [vmem:[%s3091_s1 + $0xa0] sm:$0xff] }
 0x111   :  { %1324 = vrsqrt.f32 %v556_v57  ;;  %v526_v48 = vsub.f32 %v462_v41, %v494_v56  ;;  %v2329_v34 = vmul.f32 %v1313_v39, %v609_v42  ;;  %v619_v39 = vld [vmem:[%s3091_s1 + $0xe0] sm:$0xff] }
 0x112   :  { %1326 = vrsqrt.f32 %v555_v51  ;;  %v525_v62 = vsub.f32 %v461_v32, %v493_v19  ;;  %868 = vperm.xlu0 %1268, %v2315_v49   ;;  %v617_v19 = vld [vmem:[%s3091_s1 + $0xd0] sm:$0xff]  ;;  %v620_v32 = vld [vmem:[%s3091_s1 + $0xe8] sm:$0xff] }
 0x113   :  { %v1315_v29 = vpop.eup %1314  ;;  %v558_v30 = vadd.f32 1e-05, %v526_v48  ;;  %833 = vperm.xlu1 %1269, %v2317_v6   ;;  %1328 = vrsqrt.f32 %v551_v36 }
 0x114   :  { %v557_v21 = vadd.f32 1e-05, %v525_v62  ;;  %v2327_v56 = vmul.f32 %v1315_v29, %v616_v9  ;;  %v1317_v35 = vpop.eup %1316  ;;  %v613_v9 = vld [vmem:[%s3091_s1 + $0xb0] sm:$0xff] }
 0x115   :  { %1330 = vrsqrt.f32 %v558_v30  ;;  %v2344_v51 = vmul.f32 %v1317_v35, %v611_v31  ;;  %v2359_v62 = vld [vmem:[%s3092_s2 + $0xd0] sm:$0xff] }
 0x116   :  { %1332 = vrsqrt.f32 %v557_v21  ;;  %878 = vperm.xlu0 %1268, %v2327_v56   ;;  %3152 = vst [vmem:[#allocation12_spill] sm:$0xff] %v2359_v62 }
 0x117   :  { %v1319_v57 = vpop.eup %1318  ;;  %843 = vperm.xlu1 %1269, %v2329_v34  }
 0x118   :  { %v1321_v41 = vpop.eup %1320  ;;  %v2342_v59 = vmul.f32 %v1319_v57, %v618_v10  ;;  %v622_v10 = vld [vmem:[%s3091_s1 + $0xf8] sm:$0xff] }
 0x119   :  { %v1323_v36 = vpop.eup %1322  ;;  %v649_v48 = vmul.f32 %v1321_v41, %v617_v19  ;;  %v621_v41 = vld [vmem:[%s3091_s1 + $0xf0] sm:$0xff] }
 0x11a   :  { %888 = vperm.xlu0 %1268, %v2342_v59   ;;  %v2367_v35 = vmul.f32 %v1323_v36, %v613_v9  ;;  %v2384_v36 = vld [vmem:[%s3092_s2 + $0xe0] sm:$0xff] }
 0x11b   :  { %v1325_v42 = vpop.eup %1324  ;;  %853 = vperm.xlu1 %1269, %v2344_v51   ;;  %v2363_v29 = vmul.f32 %v649_v48, %v2247_v4  ;;  %v615_v4 = vld [vmem:[%s3091_s1 + $0xc0] sm:$0xff] }
 0x11c   :  { %v1327_v30 = vpop.eup %1326  ;;  %v2365_v21 = vmul.f32 %v1325_v42, %v620_v32 }
 0x11d   :  { %3153 = vst [vmem:[#allocation13_spill] sm:$0xff] %v2363_v29  ;;  %v651_v31 = vmul.f32 %v1327_v30, %v619_v39  ;;  %v1329_v57 = vpop.eup %1328  ;;  %v688_v30 = vmul.f32 %v2087_v45, %v2041_v7  ;;  %v656_v29 = vld [vmem:[%s3092_s2 + $0x8] sm:$0xff] }
 0x11e   :  { %898 = vperm.xlu0 %1268, %v2365_v21   ;;  %v2394_v19 = vmul.f32 %v1329_v57, %v615_v4  ;;  %v658_v57 = vld [vmem:[%s3092_s2 + $0x18] sm:$0xff] }
 0x11f   :  { %v1331_v32 = vpop.eup %1330  ;;  %863 = vperm.xlu1 %1269, %v2367_v35   ;;  %v2388_v9 = vmul.f32 %v651_v31, %v2270_v3  ;;  %v2405_v3 = vld [vmem:[%s3092_s2 + $0xf0] sm:$0xff]  ;;  %v720_v45 = vsub.f32 %v656_v29, %v688_v30  ;;  %v687_v29 = vmul.f32 %v2089_v53, %v2045_v61  ;;  %v664_v61 = vld [vmem:[%s3092_s2 + $0x48] sm:$0xff]  ;;  %v700_v30 = vmul.f32 %v2201_v20, %v2103_v8 }
 0x120   :  { %v1333_v39 = vpop.eup %1332  ;;  %v2390_v42 = vmul.f32 %v1331_v32, %v622_v10  ;;  %v690_v10 = vmul.f32 %v2125_v14, %v2047_v1  ;;  %v692_v32 = vmul.f32 %v2159_v28, %v2061_v60  ;;  %v694_v14 = vmul.f32 %v2206_v16, %v2075_v46  ;;  %v655_v60 = vld [vmem:[%s3092_s2] sm:$0xff]  ;;  %v657_v53 = vld [vmem:[%s3092_s2 + $0x10] sm:$0xff] }
 0x121   :  { %v653_v62 = vmul.f32 %v1333_v39, %v621_v41  ;;  %v747_v33 = vsub.f32 %v2384_v36, %v2388_v9  ;;  %v696_v28 = vmul.f32 %v2157_v27, %v2069_v23  ;;  %v689_v46 = vmul.f32 %v2106_v13, %v2051_v5  ;;  %v666_v5 = vld [vmem:[%s3092_s2 + $0x58] sm:$0xff]  ;;  %v659_v13 = vld [vmem:[%s3092_s2 + $0x20] sm:$0xff] }
 0x122   :  { %908 = vperm.xlu0 %1268, %v2390_v42   ;;  %v722_v41 = vsub.f32 %v658_v57, %v690_v10  ;;  %v719_v16 = vsub.f32 %v655_v60, %v687_v29  ;;  %v691_v23 = vmul.f32 %v2140_v22, %v2059_v58  ;;  %v668_v58 = vld [vmem:[%s3092_s2 + $0x68] sm:$0xff]  ;;  %v661_v22 = vld [vmem:[%s3092_s2 + $0x30] sm:$0xff]  ;;  %v702_v10 = vmul.f32 %v2226_v52, %v2119_v47 }
 0x123   :  { %873 = vperm.xlu1 %1269, %v2394_v19   ;;  %v2409_v7 = vmul.f32 %v653_v62, %v2292_v2  ;;  %v660_v2 = vld [vmem:[%s3092_s2 + $0x28] sm:$0xff]  ;;  %v728_v39 = vsub.f32 %v664_v61, %v696_v28  ;;  %v721_v27 = vsub.f32 %v657_v53, %v689_v46  ;;  %v732_v57 = vsub.f32 %v668_v58, %v700_v30 }
 0x124   :  { %v724_v1 = vsub.f32 %v660_v2, %v692_v32  ;;  %v695_v8 = vmul.f32 %v2230_v50, %v2094_v18  ;;  %v697_v47 = vmul.f32 %v2258_v0, %v2111_v40  ;;  %v672_v18 = vld [vmem:[%s3092_s2 + $0x88] sm:$0xff]  ;;  %v665_v50 = vld [vmem:[%s3092_s2 + $0x50] sm:$0xff]  ;;  %v706_v2 = vmul.f32 %v2277_v38, %v2154_v26  ;;  %v674_v40 = vld [vmem:[%s3092_s2 + $0x98] sm:$0xff] }
 0x125   :  { %v749_v4 = vsub.f32 %v2405_v3, %v2409_v7  ;;  %v667_v0 = vld [vmem:[%s3092_s2 + $0x60] sm:$0xff]  ;;  %v701_v26 = vmul.f32 %v2301_v43, %v2146_v11  ;;  %v678_v11 = vld [vmem:[%s3092_s2 + $0xb8] sm:$0xff]  ;;  %v3156_v46 = vld [vmem:[#allocation7_spill] sm:$0xff] }
 0x126   :  { %982 = vperm.xlu0 %1268, %v720_v45   ;;  %v738_v29 = vsub.f32 %v674_v40, %v706_v2  ;;  %v671_v43 = vld [vmem:[%s3092_s2 + $0x80] sm:$0xff] }
 0x127   :  { %883 = vperm.xlu1 %1269, %v649_v48   ;;  %v662_v48 = vld [vmem:[%s3092_s2 + $0x38] sm:$0xff] }
 0x12a   :  { %992 = vperm.xlu0 %1268, %v722_v41   ;;  %v704_v41 = vmul.f32 %v2253_v12, %v2130_v15  ;;  %v699_v15 = vmul.f32 %v2281_v55, %v2123_v54  ;;  %v729_v12 = vsub.f32 %v665_v50, %v697_v47  ;;  %v676_v54 = vld [vmem:[%s3092_s2 + $0xa8] sm:$0xff]  ;;  %v669_v55 = vld [vmem:[%s3092_s2 + $0x70] sm:$0xff]  ;;  %v3165_v50 = vld [vmem:[#allocation13_spill] sm:$0xff] }
 0x12b   :  { %893 = vperm.xlu1 %1269, %v651_v31   ;;  %v726_v31 = vsub.f32 %v662_v48, %v694_v14  ;;  %v708_v14 = vmul.f32 %v2299_v44, %v2170_v63  ;;  %v3154_v48 = vld [vmem:[#allocation4_spill] sm:$0xff]  ;;  %v3155_v63 = vld [vmem:[#allocation2_spill] sm:$0xff] }
 0x12c   :  { %v731_v38 = vsub.f32 %v667_v0, %v699_v15  ;;  %v710_v60 = vmul.f32 %v2315_v49, %v3154_v48  ;;  %v703_v44 = vmul.f32 %v2317_v6, %v3155_v63  ;;  %v3157_v49 = vld [vmem:[#allocation3_spill] sm:$0xff] }
 0x12d   :  { %v740_v28 = vsub.f32 %v676_v54, %v708_v14  ;;  %v705_v53 = vmul.f32 %v2329_v34, %v3157_v49  ;;  %v680_v6 = vld [vmem:[%s3092_s2 + $0xc8] sm:$0xff]  ;;  %v682_v34 = vld [vmem:[%s3092_s2 + $0xd8] sm:$0xff] }
 0x12e   :  { %1002 = vperm.xlu0 %1268, %v724_v1   ;;  %v736_v1 = vsub.f32 %v672_v18, %v704_v41  ;;  %v742_v61 = vsub.f32 %v678_v11, %v710_v60  ;;  %v3164_v18 = vld [vmem:[#allocation12_spill] sm:$0xff] }
 0x12f   :  { %903 = vperm.xlu1 %1269, %v653_v62   ;;  %v698_v62 = vmul.f32 %v2179_v24, %v2085_v37  ;;  %v693_v37 = vmul.f32 %v2181_v25, %v2067_v17  ;;  %v723_v24 = vsub.f32 %v659_v13, %v691_v23  ;;  %v670_v17 = vld [vmem:[%s3092_s2 + $0x78] sm:$0xff]  ;;  %v663_v25 = vld [vmem:[%s3092_s2 + $0x40] sm:$0xff]  ;;  %v3166_v2 = vsub.f32 %v3164_v18, %v3165_v50 }
 0x130   :  { %v734_v32 = vsub.f32 %v670_v17, %v702_v10  ;;  %v727_v52 = vsub.f32 %v663_v25, %v695_v8  ;;  %v3158_v23 = vld [vmem:[#allocation9_spill] sm:$0xff]  ;;  %v3162_v8 = vld [vmem:[#allocation11_spill] sm:$0xff] }
 0x131   :  { %v730_v45 = vsub.f32 %v666_v5, %v698_v62  ;;  %v725_v20 = vsub.f32 %v661_v22, %v693_v37  ;;  %v735_v62 = vsub.f32 %v671_v43, %v703_v44  ;;  %v3160_v37 = vld [vmem:[#allocation10_spill] sm:$0xff] }
 0x132   :  { %1012 = vperm.xlu0 %1268, %v726_v31   ;;  %v733_v31 = vsub.f32 %v669_v55, %v701_v26 }
 0x133   :  { %977 = vperm.xlu1 %1269, %v719_v16   ;;  %v712_v16 = vmul.f32 %v2327_v56, %v3156_v46  ;;  %v3159_v56 = vld [vmem:[#allocation5_spill] sm:$0xff] }
 0x134   :  { %v707_v13 = vmul.f32 %v2344_v51, %v3159_v56  ;;  %v684_v51 = vld [vmem:[%s3092_s2 + $0xe8] sm:$0xff] }
 0x135   :  { %v744_v5 = vsub.f32 %v680_v6, %v712_v16 }
 0x136   :  { %1022 = vperm.xlu0 %1268, %v728_v39   ;;  %v673_v39 = vld [vmem:[%s3092_s2 + $0x90] sm:$0xff] }
 0x137   :  { %987 = vperm.xlu1 %1269, %v721_v27   ;;  %v714_v27 = vmul.f32 %v2342_v59, %v3158_v23  ;;  %v737_v30 = vsub.f32 %v673_v39, %v705_v53  ;;  %v3161_v59 = vld [vmem:[#allocation6_spill] sm:$0xff]  ;;  %v1335_v53 = vld [vmem:[%s3090_s0 + $0x18] sm:$0xff] }
 0x138   :  { %v709_v22 = vmul.f32 %v2367_v35, %v3161_v59  ;;  %v686_v35 = vld [vmem:[%s3092_s2 + $0xf8] sm:$0xff] }
 0x139   :  { %v746_v58 = vsub.f32 %v682_v34, %v714_v27 }
 0x13a   :  { %1032 = vperm.xlu0 %1268, %v730_v45   ;;  %v675_v45 = vld [vmem:[%s3092_s2 + $0xa0] sm:$0xff] }
 0x13b   :  { %997 = vperm.xlu1 %1269, %v723_v24   ;;  %v716_v24 = vmul.f32 %v2365_v21, %v3160_v37  ;;  %v739_v10 = vsub.f32 %v675_v45, %v707_v13  ;;  %v3163_v21 = vld [vmem:[#allocation8_spill] sm:$0xff]  ;;  %v1337_v13 = vld [vmem:[%s3090_s0 + $0x38] sm:$0xff] }
 0x13c   :  { %v711_v25 = vmul.f32 %v2394_v19, %v3163_v21 }
 0x13d   :  { %v748_v17 = vsub.f32 %v684_v51, %v716_v24 }
 0x13e   :  { %1042 = vperm.xlu0 %1268, %v732_v57   ;;  %v677_v57 = vld [vmem:[%s3092_s2 + $0xb0] sm:$0xff] }
 0x13f   :  { %1007 = vperm.xlu1 %1269, %v725_v20   ;;  %v718_v20 = vmul.f32 %v2390_v42, %v3162_v8  ;;  %v741_v41 = vsub.f32 %v677_v57, %v709_v22  ;;  %v1339_v22 = vld [vmem:[%s3090_s0 + $0x58] sm:$0xff] }
 0x141   :  { %v750_v47 = vsub.f32 %v686_v35, %v718_v20  ;;  %v1342_v35 = vld [vmem:[%s3090_s0] sm:$0xff] }
 0x142   :  { %1052 = vperm.xlu0 %1268, %v734_v32   ;;  %v679_v32 = vld [vmem:[%s3092_s2 + $0xc0] sm:$0xff] }
 0x143   :  { %1017 = vperm.xlu1 %1269, %v727_v52   ;;  %v743_v52 = vsub.f32 %v679_v32, %v711_v25  ;;  %v1341_v25 = vld [vmem:[%s3090_s0 + $0x78] sm:$0xff] }
 0x146   :  { %1062 = vperm.xlu0 %1268, %v736_v1  }
 0x147   :  { %1027 = vperm.xlu1 %1269, %v729_v12  }
 0x14a   :  { %1072 = vperm.xlu0 %1268, %v738_v29  }
 0x14b   :  { %1037 = vperm.xlu1 %1269, %v731_v38  }
 0x14e   :  { %1082 = vperm.xlu0 %1268, %v740_v28  }
 0x14f   :  { %1047 = vperm.xlu1 %1269, %v733_v31  }
 0x152   :  { %1092 = vperm.xlu0 %1268, %v742_v61   ;;  %v1334_v61 = vld [vmem:[%s3090_s0 + $0x10] sm:$0xff] }
 0x153   :  { %1057 = vperm.xlu1 %1269, %v735_v62  }
 0x156   :  { %1102 = vperm.xlu0 %1268, %v744_v5   ;;  %v1336_v5 = vld [vmem:[%s3090_s0 + $0x30] sm:$0xff] }
 0x157   :  { %1067 = vperm.xlu1 %1269, %v737_v30  }
 0x15a   :  { %1112 = vperm.xlu0 %1268, %v746_v58   ;;  %v1338_v58 = vld [vmem:[%s3090_s0 + $0x50] sm:$0xff] }
 0x15b   :  { %1077 = vperm.xlu1 %1269, %v739_v10  }
 0x15e   :  { %1122 = vperm.xlu0 %1268, %v748_v17   ;;  %v1340_v17 = vld [vmem:[%s3090_s0 + $0x70] sm:$0xff] }
 0x15f   :  { %1087 = vperm.xlu1 %1269, %v741_v41  }
 0x162   :  { %1132 = vperm.xlu0 %1268, %v750_v47   ;;  %v1343_v47 = vld [vmem:[%s3090_s0 + $0x8] sm:$0xff] }
 0x163   :  { %1097 = vperm.xlu1 %1269, %v743_v52  }
 0x165   :  { %v759_v42 = vpop.permute.xlu1 %758 }
 0x166   :  { %v2564_v15 = vpop.permute.xlu0 %753  ;;  %v913_v49 = vmul.f32 %v1334_v61, %v759_v42  ;;  %v914_v62 = vmul.f32 %v1335_v53, %v759_v42 }
 0x167   :  { %1107 = vperm.xlu1 %1269, %v3166_v2   ;;  %v911_v32 = vmul.f32 %v1342_v35, %v2564_v15  ;;  %v912_v52 = vmul.f32 %v1343_v47, %v2564_v15  ;;  %v1346_v15 = vld [vmem:[%s3090_s0 + $0x20] sm:$0xff] }
 0x16a   :  { %v2556_v19 = vpop.permute.xlu1 %763 }
 0x16b   :  { %1117 = vperm.xlu1 %1269, %v747_v33  }
 0x16e   :  { %v769_v1 = vpop.permute.xlu1 %768 }
 0x16f   :  { %1127 = vperm.xlu1 %1269, %v749_v4   ;;  %v917_v56 = vmul.f32 %v1336_v5, %v769_v1  ;;  %v918_v30 = vmul.f32 %v1337_v13, %v769_v1 }
 0x172   :  { %v2566_v12 = vpop.permute.xlu1 %773 }
 0x175   :  { %v2568_v40 = vpop.permute.xlu0 %798 }
 0x176   :  { %v779_v0 = vpop.permute.xlu1 %778 }
 0x177   :  { %v921_v59 = vmul.f32 %v1338_v58, %v779_v0  ;;  %v922_v10 = vmul.f32 %v1339_v22, %v779_v0  ;;  %v1350_v58 = vld [vmem:[%s3090_s0 + $0x40] sm:$0xff]  ;;  %v1351_v22 = vld [vmem:[%s3090_s0 + $0x48] sm:$0xff] }
 0x179   :  { %v2570_v14 = vpop.permute.xlu0 %808 }
 0x17a   :  { %v2572_v29 = vpop.permute.xlu1 %783 }
 0x17d   :  { %v2574_v26 = vpop.permute.xlu0 %818 }
 0x17e   :  { %v789_v36 = vpop.permute.xlu1 %788 }
 0x17f   :  { %v925_v21 = vmul.f32 %v1340_v17, %v789_v36  ;;  %v926_v41 = vmul.f32 %v1341_v25, %v789_v36  ;;  %v1344_v36 = vld [vmem:[%s3090_s0 + $0x90] sm:$0xff] }
 0x180   :  { %v929_v61 = vmul.f32 %v1344_v36, %v2568_v40  ;;  %v1352_v25 = vld [vmem:[%s3090_s0 + $0xd0] sm:$0xff] }
 0x181   :  { %v2576_v33 = vpop.permute.xlu0 %828  ;;  %v1356_v36 = vld [vmem:[%s3090_s0 + $0xf0] sm:$0xff] }
 0x182   :  { %v2578_v9 = vpop.permute.xlu1 %793 }
 0x185   :  { %v2580_v3 = vpop.permute.xlu0 %838 }
 0x186   :  { %v2582_v7 = vpop.permute.xlu1 %803 }
 0x189   :  { %v2584_v4 = vpop.permute.xlu0 %848 }
 0x18a   :  { %v2586_v38 = vpop.permute.xlu1 %813 }
 0x18d   :  { %v2588_v54 = vpop.permute.xlu0 %858 }
 0x18e   :  { %v2590_v55 = vpop.permute.xlu1 %823 }
 0x191   :  { %v2592_v48 = vpop.permute.xlu0 %868 }
 0x192   :  { %v2594_v60 = vpop.permute.xlu1 %833 }
 0x195   :  { %v2596_v28 = vpop.permute.xlu0 %878 }
 0x196   :  { %v2598_v63 = vpop.permute.xlu1 %843 }
 0x199   :  { %v2600_v44 = vpop.permute.xlu0 %888 }
 0x19a   :  { %v2602_v31 = vpop.permute.xlu1 %853 }
 0x19d   :  { %v2604_v11 = vpop.permute.xlu0 %898 }
 0x19e   :  { %v2606_v43 = vpop.permute.xlu1 %863 }
 0x1a1   :  { %v2608_v46 = vpop.permute.xlu0 %908 }
 0x1a2   :  { %v2610_v16 = vpop.permute.xlu1 %873 }
 0x1a5   :  { %v983_v6 = vpop.permute.xlu0 %982 }
 0x1a6   :  { %v2618_v39 = vpop.permute.xlu1 %883  ;;  %v1137_v23 = vadd.f32 %v983_v6, %v913_v49  ;;  %v1138_v27 = vadd.f32 %v983_v6, %v914_v62  ;;  %v1345_v49 = vld [vmem:[%s3090_s0 + $0x98] sm:$0xff]  ;;  %v915_v62 = vmul.f32 %v1346_v15, %v2556_v19  ;;  %v1347_v6 = vld [vmem:[%s3090_s0 + $0x28] sm:$0xff] }
 0x1a7   :  { %v930_v53 = vmul.f32 %v1345_v49, %v2568_v40  ;;  %v916_v40 = vmul.f32 %v1347_v6, %v2556_v19 }
 0x1a8   :  { %1201 = vst [vmem:[%s3093_s3 + $0x10] sm:$0xff] %v1137_v23  ;;  %1202 = vst.msk [vmem:[%s3093_s3 + $0x18] sm:$0xff] %vm78_vm0, %v1138_v27 }
 0x1a9   :  { %v993_v34 = vpop.permute.xlu0 %992 }
 0x1aa   :  { %v2633_v45 = vpop.permute.xlu1 %893  ;;  %v1141_v37 = vadd.f32 %v993_v34, %v917_v56  ;;  %v1142_v24 = vadd.f32 %v993_v34, %v918_v30  ;;  %v1348_v34 = vld [vmem:[%s3090_s0 + $0xb0] sm:$0xff] }
 0x1ab   :  { %v933_v19 = vmul.f32 %v1348_v34, %v2570_v14 }
 0x1ac   :  { %1205 = vst [vmem:[%s3093_s3 + $0x30] sm:$0xff] %v1141_v37  ;;  %1206 = vst.msk [vmem:[%s3093_s3 + $0x38] sm:$0xff] %vm78_vm0, %v1142_v24  ;;  %v1349_v37 = vld [vmem:[%s3090_s0 + $0xb8] sm:$0xff] }
 0x1ad   :  { %v1003_v51 = vpop.permute.xlu0 %1002  ;;  %v934_v24 = vmul.f32 %v1349_v37, %v2570_v14  ;;  %v920_v14 = vmul.f32 %v1351_v22, %v2566_v12 }
 0x1ae   :  { %v2648_v57 = vpop.permute.xlu1 %903  ;;  %v1145_v8 = vadd.f32 %v1003_v51, %v921_v59  ;;  %v1146_v20 = vadd.f32 %v1003_v51, %v922_v10  ;;  %v919_v59 = vmul.f32 %v1350_v58, %v2566_v12  ;;  %v937_v12 = vmul.f32 %v1352_v25, %v2574_v26 }
 0x1b0   :  { %1209 = vst [vmem:[%s3093_s3 + $0x50] sm:$0xff] %v1145_v8  ;;  %1210 = vst.msk [vmem:[%s3093_s3 + $0x58] sm:$0xff] %vm78_vm0, %v1146_v20 }
 0x1b1   :  { %v1013_v42 = vpop.permute.xlu0 %1012 }
 0x1b2   :  { %v978_v18 = vpop.permute.xlu1 %977  ;;  %v1149_v50 = vadd.f32 %v1013_v42, %v925_v21  ;;  %v1150_v2 = vadd.f32 %v1013_v42, %v926_v41  ;;  %v1353_v41 = vld [vmem:[%s3090_s0 + $0xd8] sm:$0xff] }
 0x1b3   :  { %v1135_v1 = vadd.f32 %v978_v18, %v911_v32  ;;  %v1136_v0 = vadd.f32 %v978_v18, %v912_v52  ;;  %v938_v35 = vmul.f32 %v1353_v41, %v2574_v26  ;;  %v1354_v32 = vld [vmem:[%s3090_s0 + $0x60] sm:$0xff]  ;;  %v1355_v52 = vld [vmem:[%s3090_s0 + $0x68] sm:$0xff] }
 0x1b4   :  { %1213 = vst [vmem:[%s3093_s3 + $0x70] sm:$0xff] %v1149_v50  ;;  %1214 = vst.msk [vmem:[%s3093_s3 + $0x78] sm:$0xff] %vm78_vm0, %v1150_v2  ;;  %v923_v47 = vmul.f32 %v1354_v32, %v2572_v29  ;;  %v924_v26 = vmul.f32 %v1355_v52, %v2572_v29  ;;  %v941_v29 = vmul.f32 %v1356_v36, %v2576_v33 }
 0x1b5   :  { %1199 = vst [vmem:[%s3093_s3] sm:$0xff] %v1135_v1  ;;  %1200 = vst.msk [vmem:[%s3093_s3 + $0x8] sm:$0xff] %vm78_vm0, %v1136_v0  ;;  %v1023_v23 = vpop.permute.xlu0 %1022 }
 0x1b6   :  { %v988_v27 = vpop.permute.xlu1 %987  ;;  %v1153_v5 = vadd.f32 %v1023_v23, %v929_v61  ;;  %v1154_v56 = vadd.f32 %v1023_v23, %v930_v53  ;;  %v1357_v61 = vld [vmem:[%s3090_s0 + $0xf8] sm:$0xff]  ;;  %v1358_v53 = vld [vmem:[%s3090_s0 + $0x80] sm:$0xff] }
 0x1b7   :  { %v1139_v13 = vadd.f32 %v988_v27, %v915_v62  ;;  %v1140_v30 = vadd.f32 %v988_v27, %v916_v40  ;;  %v942_v49 = vmul.f32 %v1357_v61, %v2576_v33  ;;  %v927_v15 = vmul.f32 %v1358_v53, %v2578_v9  ;;  %v1359_v62 = vld [vmem:[%s3090_s0 + $0x88] sm:$0xff] }
 0x1b8   :  { %1217 = vst [vmem:[%s3093_s3 + $0x90] sm:$0xff] %v1153_v5  ;;  %1218 = vst.msk [vmem:[%s3093_s3 + $0x98] sm:$0xff] %vm78_vm0, %v1154_v56  ;;  %v928_v33 = vmul.f32 %v1359_v62, %v2578_v9  ;;  %v1372_v62 = vld [vmem:[%s3090_s0 + $0x170] sm:$0xff] }
 0x1b9   :  { %1203 = vst [vmem:[%s3093_s3 + $0x20] sm:$0xff] %v1139_v13  ;;  %1204 = vst.msk [vmem:[%s3093_s3 + $0x28] sm:$0xff] %vm78_vm0, %v1140_v30  ;;  %v1033_v10 = vpop.permute.xlu0 %1032  ;;  %v1360_v13 = vld [vmem:[%s3090_s0 + $0x110] sm:$0xff]  ;;  %v1361_v30 = vld [vmem:[%s3090_s0 + $0x118] sm:$0xff] }
 0x1ba   :  { %v998_v51 = vpop.permute.xlu1 %997  ;;  %v1157_v8 = vadd.f32 %v1033_v10, %v933_v19  ;;  %v1158_v20 = vadd.f32 %v1033_v10, %v934_v24  ;;  %v945_v9 = vmul.f32 %v1360_v13, %v2580_v3  ;;  %v946_v34 = vmul.f32 %v1361_v30, %v2580_v3  ;;  %v1362_v19 = vld [vmem:[%s3090_s0 + $0xa0] sm:$0xff]  ;;  %v1363_v24 = vld [vmem:[%s3090_s0 + $0xa8] sm:$0xff] }
 0x1bb   :  { %v1143_v17 = vadd.f32 %v998_v51, %v919_v59  ;;  %v1144_v21 = vadd.f32 %v998_v51, %v920_v14  ;;  %v931_v37 = vmul.f32 %v1362_v19, %v2582_v7  ;;  %v932_v3 = vmul.f32 %v1363_v24, %v2582_v7  ;;  %v1376_v19 = vld [vmem:[%s3090_s0 + $0x190] sm:$0xff] }
 0x1bc   :  { %1221 = vst [vmem:[%s3093_s3 + $0xb0] sm:$0xff] %v1157_v8  ;;  %1222 = vst.msk [vmem:[%s3093_s3 + $0xb8] sm:$0xff] %vm78_vm0, %v1158_v20  ;;  %v1364_v8 = vld [vmem:[%s3090_s0 + $0x130] sm:$0xff]  ;;  %v1365_v20 = vld [vmem:[%s3090_s0 + $0x138] sm:$0xff] }
 0x1bd   :  { %1207 = vst [vmem:[%s3093_s3 + $0x40] sm:$0xff] %v1143_v17  ;;  %1208 = vst.msk [vmem:[%s3093_s3 + $0x48] sm:$0xff] %vm78_vm0, %v1144_v21  ;;  %v1043_v42 = vpop.permute.xlu0 %1042  ;;  %v949_v7 = vmul.f32 %v1364_v8, %v2584_v4  ;;  %v950_v17 = vmul.f32 %v1365_v20, %v2584_v4  ;;  %v1366_v21 = vld [vmem:[%s3090_s0 + $0xc0] sm:$0xff]  ;;  %v1380_v20 = vld [vmem:[%s3090_s0 + $0x1b0] sm:$0xff] }
 0x1be   :  { %v1008_v18 = vpop.permute.xlu1 %1007  ;;  %v1161_v50 = vadd.f32 %v1043_v42, %v937_v12  ;;  %v1162_v2 = vadd.f32 %v1043_v42, %v938_v35  ;;  %v935_v25 = vmul.f32 %v1366_v21, %v2586_v38  ;;  %v1367_v12 = vld [vmem:[%s3090_s0 + $0xc8] sm:$0xff]  ;;  %v1368_v42 = vld [vmem:[%s3090_s0 + $0x150] sm:$0xff] }
 0x1bf   :  { %v1147_v1 = vadd.f32 %v1008_v18, %v923_v47  ;;  %v1148_v0 = vadd.f32 %v1008_v18, %v924_v26  ;;  %v936_v4 = vmul.f32 %v1367_v12, %v2586_v38  ;;  %v953_v38 = vmul.f32 %v1368_v42, %v2588_v54  ;;  %v1369_v18 = vld [vmem:[%s3090_s0 + $0x158] sm:$0xff]  ;;  %v1384_v42 = vld [vmem:[%s3090_s0 + $0x1d0] sm:$0xff] }
 0x1c0   :  { %1225 = vst [vmem:[%s3093_s3 + $0xd0] sm:$0xff] %v1161_v50  ;;  %1226 = vst.msk [vmem:[%s3093_s3 + $0xd8] sm:$0xff] %vm78_vm0, %v1162_v2  ;;  %v954_v50 = vmul.f32 %v1369_v18, %v2588_v54  ;;  %v1370_v2 = vld [vmem:[%s3090_s0 + $0xe0] sm:$0xff] }
 0x1c1   :  { %1211 = vst [vmem:[%s3093_s3 + $0x60] sm:$0xff] %v1147_v1  ;;  %1212 = vst.msk [vmem:[%s3093_s3 + $0x68] sm:$0xff] %vm78_vm0, %v1148_v0  ;;  %v1053_v6 = vpop.permute.xlu0 %1052  ;;  %v939_v1 = vmul.f32 %v1370_v2, %v2590_v55  ;;  %v1371_v0 = vld [vmem:[%s3090_s0 + $0xe8] sm:$0xff] }
 0x1c2   :  { %v1018_v40 = vpop.permute.xlu1 %1017  ;;  %v1165_v23 = vadd.f32 %v1053_v6, %v941_v29  ;;  %v1166_v27 = vadd.f32 %v1053_v6, %v942_v49  ;;  %v940_v54 = vmul.f32 %v1371_v0, %v2590_v55  ;;  %v957_v55 = vmul.f32 %v1372_v62, %v2592_v48 }
 0x1c3   :  { %v1151_v5 = vadd.f32 %v1018_v40, %v927_v15  ;;  %v1152_v56 = vadd.f32 %v1018_v40, %v928_v33  ;;  %v1373_v33 = vld [vmem:[%s3090_s0 + $0x178] sm:$0xff]  ;;  %v1374_v40 = vld [vmem:[%s3090_s0 + $0x100] sm:$0xff] }
 0x1c4   :  { %1229 = vst [vmem:[%s3093_s3 + $0xf0] sm:$0xff] %v1165_v23  ;;  %1230 = vst.msk [vmem:[%s3093_s3 + $0xf8] sm:$0xff] %vm78_vm0, %v1166_v27  ;;  %v958_v6 = vmul.f32 %v1373_v33, %v2592_v48  ;;  %v943_v23 = vmul.f32 %v1374_v40, %v2594_v60  ;;  %v1375_v27 = vld [vmem:[%s3090_s0 + $0x108] sm:$0xff] }
 0x1c5   :  { %1215 = vst [vmem:[%s3093_s3 + $0x80] sm:$0xff] %v1151_v5  ;;  %1216 = vst.msk [vmem:[%s3093_s3 + $0x88] sm:$0xff] %vm78_vm0, %v1152_v56  ;;  %v1063_v58 = vpop.permute.xlu0 %1062  ;;  %v944_v48 = vmul.f32 %v1375_v27, %v2594_v60  ;;  %v961_v60 = vmul.f32 %v1376_v19, %v2596_v28 }
 0x1c6   :  { %v1028_v59 = vpop.permute.xlu1 %1027  ;;  %v1169_v22 = vadd.f32 %v1063_v58, %v945_v9  ;;  %v1170_v14 = vadd.f32 %v1063_v58, %v946_v34 }
 0x1c7   :  { %v1155_v10 = vadd.f32 %v1028_v59, %v931_v37  ;;  %v1156_v51 = vadd.f32 %v1028_v59, %v932_v3  ;;  %v1377_v37 = vld [vmem:[%s3090_s0 + $0x198] sm:$0xff]  ;;  %v1378_v3 = vld [vmem:[%s3090_s0 + $0x120] sm:$0xff]  ;;  %v1379_v59 = vld [vmem:[%s3090_s0 + $0x128] sm:$0xff] }
 0x1c8   :  { %1233 = vst [vmem:[%s3093_s3 + $0x110] sm:$0xff] %v1169_v22  ;;  %1234 = vst.msk [vmem:[%s3093_s3 + $0x118] sm:$0xff] %vm78_vm0, %v1170_v14  ;;  %v962_v24 = vmul.f32 %v1377_v37, %v2596_v28  ;;  %v947_v58 = vmul.f32 %v1378_v3, %v2598_v63  ;;  %v948_v28 = vmul.f32 %v1379_v59, %v2598_v63  ;;  %v1394_v37 = vld [vmem:[%s3090_s0 + $0x1c0] sm:$0xff] }
 0x1c9   :  { %1219 = vst [vmem:[%s3093_s3 + $0xa0] sm:$0xff] %v1155_v10  ;;  %1220 = vst.msk [vmem:[%s3093_s3 + $0xa8] sm:$0xff] %vm78_vm0, %v1156_v51  ;;  %v1073_v41 = vpop.permute.xlu0 %1072  ;;  %v965_v63 = vmul.f32 %v1380_v20, %v2600_v44 }
 0x1ca   :  { %v1038_v35 = vpop.permute.xlu1 %1037  ;;  %v1173_v32 = vadd.f32 %v1073_v41, %v949_v7  ;;  %v1174_v47 = vadd.f32 %v1073_v41, %v950_v17  ;;  %v1381_v17 = vld [vmem:[%s3090_s0 + $0x1b8] sm:$0xff] }
 0x1cb   :  { %v1159_v52 = vadd.f32 %v1038_v35, %v935_v25  ;;  %v1160_v26 = vadd.f32 %v1038_v35, %v936_v4  ;;  %v966_v21 = vmul.f32 %v1381_v17, %v2600_v44  ;;  %v1382_v25 = vld [vmem:[%s3090_s0 + $0x140] sm:$0xff]  ;;  %v1383_v4 = vld [vmem:[%s3090_s0 + $0x148] sm:$0xff] }
 0x1cc   :  { %1237 = vst [vmem:[%s3093_s3 + $0x130] sm:$0xff] %v1173_v32  ;;  %1238 = vst.msk [vmem:[%s3093_s3 + $0x138] sm:$0xff] %vm78_vm0, %v1174_v47  ;;  %v951_v12 = vmul.f32 %v1382_v25, %v2602_v31  ;;  %v952_v44 = vmul.f32 %v1383_v4, %v2602_v31  ;;  %v969_v31 = vmul.f32 %v1384_v42, %v2604_v11 }
 0x1cd   :  { %1223 = vst [vmem:[%s3093_s3 + $0xc0] sm:$0xff] %v1159_v52  ;;  %1224 = vst.msk [vmem:[%s3093_s3 + $0xc8] sm:$0xff] %vm78_vm0, %v1160_v26  ;;  %v1083_v36 = vpop.permute.xlu0 %1082 }
 0x1ce   :  { %v1048_v29 = vpop.permute.xlu1 %1047  ;;  %v1177_v61 = vadd.f32 %v1083_v36, %v953_v38  ;;  %v1178_v49 = vadd.f32 %v1083_v36, %v954_v50  ;;  %v1385_v38 = vld [vmem:[%s3090_s0 + $0x1d8] sm:$0xff]  ;;  %v1386_v50 = vld [vmem:[%s3090_s0 + $0x160] sm:$0xff] }
 0x1cf   :  { %v1163_v53 = vadd.f32 %v1048_v29, %v939_v1  ;;  %v1164_v15 = vadd.f32 %v1048_v29, %v940_v54  ;;  %v970_v18 = vmul.f32 %v1385_v38, %v2604_v11  ;;  %v955_v2 = vmul.f32 %v1386_v50, %v2606_v43  ;;  %v1387_v1 = vld [vmem:[%s3090_s0 + $0x168] sm:$0xff] }
 0x1d0   :  { %1241 = vst [vmem:[%s3093_s3 + $0x150] sm:$0xff] %v1177_v61  ;;  %1242 = vst.msk [vmem:[%s3093_s3 + $0x158] sm:$0xff] %vm78_vm0, %v1178_v49  ;;  %v956_v11 = vmul.f32 %v1387_v1, %v2606_v43 }
 0x1d1   :  { %1227 = vst [vmem:[%s3093_s3 + $0xe0] sm:$0xff] %v1163_v53  ;;  %1228 = vst.msk [vmem:[%s3093_s3 + $0xe8] sm:$0xff] %vm78_vm0, %v1164_v15  ;;  %v1093_v5 = vpop.permute.xlu0 %1092  ;;  %v1388_v53 = vld [vmem:[%s3090_s0 + $0x1f0] sm:$0xff]  ;;  %v1389_v15 = vld [vmem:[%s3090_s0 + $0x1f8] sm:$0xff] }
 0x1d2   :  { %v1058_v56 = vpop.permute.xlu1 %1057  ;;  %v1181_v13 = vadd.f32 %v1093_v5, %v957_v55  ;;  %v1182_v9 = vadd.f32 %v1093_v5, %v958_v6  ;;  %v973_v43 = vmul.f32 %v1388_v53, %v2608_v46  ;;  %v974_v62 = vmul.f32 %v1389_v15, %v2608_v46  ;;  %v1390_v55 = vld [vmem:[%s3090_s0 + $0x180] sm:$0xff]  ;;  %v1391_v6 = vld [vmem:[%s3090_s0 + $0x188] sm:$0xff] }
 0x1d3   :  { %v1167_v30 = vadd.f32 %v1058_v56, %v943_v23  ;;  %v1168_v34 = vadd.f32 %v1058_v56, %v944_v48  ;;  %v959_v33 = vmul.f32 %v1390_v55, %v2610_v16  ;;  %v960_v46 = vmul.f32 %v1391_v6, %v2610_v16  ;;  %v1392_v16 = vld [vmem:[%s3090_s0 + $0x1a0] sm:$0xff] }
 0x1d4   :  { %1245 = vst [vmem:[%s3093_s3 + $0x170] sm:$0xff] %v1181_v13  ;;  %1246 = vst.msk [vmem:[%s3093_s3 + $0x178] sm:$0xff] %vm78_vm0, %v1182_v9  ;;  %v963_v13 = vmul.f32 %v1392_v16, %v2618_v39  ;;  %v1393_v9 = vld [vmem:[%s3090_s0 + $0x1a8] sm:$0xff] }
 0x1d5   :  { %1231 = vst [vmem:[%s3093_s3 + $0x100] sm:$0xff] %v1167_v30  ;;  %1232 = vst.msk [vmem:[%s3093_s3 + $0x108] sm:$0xff] %vm78_vm0, %v1168_v34  ;;  %v1103_v22 = vpop.permute.xlu0 %1102  ;;  %v964_v30 = vmul.f32 %v1393_v9, %v2618_v39  ;;  %v1395_v39 = vld [vmem:[%s3090_s0 + $0x1c8] sm:$0xff] }
 0x1d6   :  { %v1068_v14 = vpop.permute.xlu1 %1067  ;;  %v1185_v10 = vadd.f32 %v1103_v22, %v961_v60  ;;  %v1186_v51 = vadd.f32 %v1103_v22, %v962_v24  ;;  %v967_v24 = vmul.f32 %v1394_v37, %v2633_v45  ;;  %v968_v3 = vmul.f32 %v1395_v39, %v2633_v45  ;;  %v1396_v22 = vld [vmem:[%s3090_s0 + $0x1e0] sm:$0xff]  ;;  %v1397_v45 = vld [vmem:[%s3090_s0 + $0x1e8] sm:$0xff] }
 0x1d7   :  { %v1171_v8 = vadd.f32 %v1068_v14, %v947_v58  ;;  %v1172_v7 = vadd.f32 %v1068_v14, %v948_v28  ;;  %v971_v14 = vmul.f32 %v1396_v22, %v2648_v57 }
 0x1d8   :  { %1249 = vst [vmem:[%s3093_s3 + $0x190] sm:$0xff] %v1185_v10  ;;  %1250 = vst.msk [vmem:[%s3093_s3 + $0x198] sm:$0xff] %vm78_vm0, %v1186_v51  ;;  %v972_v10 = vmul.f32 %v1397_v45, %v2648_v57 }
 0x1d9   :  { %1235 = vst [vmem:[%s3093_s3 + $0x120] sm:$0xff] %v1171_v8  ;;  %1236 = vst.msk [vmem:[%s3093_s3 + $0x128] sm:$0xff] %vm78_vm0, %v1172_v7  ;;  %v1113_v41 = vpop.permute.xlu0 %1112 }
 0x1da   :  { %v1078_v35 = vpop.permute.xlu1 %1077  ;;  %v1189_v32 = vadd.f32 %v1113_v41, %v965_v63  ;;  %v1190_v47 = vadd.f32 %v1113_v41, %v966_v21 }
 0x1db   :  { %v1175_v52 = vadd.f32 %v1078_v35, %v951_v12  ;;  %v1176_v26 = vadd.f32 %v1078_v35, %v952_v44 }
 0x1dc   :  { %1253 = vst [vmem:[%s3093_s3 + $0x1b0] sm:$0xff] %v1189_v32  ;;  %1254 = vst.msk [vmem:[%s3093_s3 + $0x1b8] sm:$0xff] %vm78_vm0, %v1190_v47 }
 0x1dd   :  { %1239 = vst [vmem:[%s3093_s3 + $0x140] sm:$0xff] %v1175_v52  ;;  %1240 = vst.msk [vmem:[%s3093_s3 + $0x148] sm:$0xff] %vm78_vm0, %v1176_v26  ;;  %v1123_v0 = vpop.permute.xlu0 %1122 }
 0x1de   :  { %v1088_v54 = vpop.permute.xlu1 %1087  ;;  %v1193_v36 = vadd.f32 %v1123_v0, %v969_v31  ;;  %v1194_v29 = vadd.f32 %v1123_v0, %v970_v18 }
 0x1df   :  { %v1179_v61 = vadd.f32 %v1088_v54, %v955_v2  ;;  %v1180_v49 = vadd.f32 %v1088_v54, %v956_v11 }
 0x1e0   :  { %1257 = vst [vmem:[%s3093_s3 + $0x1d0] sm:$0xff] %v1193_v36  ;;  %1258 = vst.msk [vmem:[%s3093_s3 + $0x1d8] sm:$0xff] %vm78_vm0, %v1194_v29 }
 0x1e1   :  { %1243 = vst [vmem:[%s3093_s3 + $0x160] sm:$0xff] %v1179_v61  ;;  %1244 = vst.msk [vmem:[%s3093_s3 + $0x168] sm:$0xff] %vm78_vm0, %v1180_v49  ;;  %v1133_v40 = vpop.permute.xlu0 %1132 }
 0x1e2   :  { %v1098_v23 = vpop.permute.xlu1 %1097  ;;  %v1197_v27 = vadd.f32 %v1133_v40, %v973_v43  ;;  %v1198_v48 = vadd.f32 %v1133_v40, %v974_v62 }
 0x1e3   :  { %v1183_v5 = vadd.f32 %v1098_v23, %v959_v33  ;;  %v1184_v56 = vadd.f32 %v1098_v23, %v960_v46 }
 0x1e4   :  { %1261 = vst [vmem:[%s3093_s3 + $0x1f0] sm:$0xff] %v1197_v27  ;;  %1262 = vst.msk [vmem:[%s3093_s3 + $0x1f8] sm:$0xff] %vm78_vm0, %v1198_v48 }
 0x1e5   :  { %1247 = vst [vmem:[%s3093_s3 + $0x180] sm:$0xff] %v1183_v5  ;;  %1248 = vst.msk [vmem:[%s3093_s3 + $0x188] sm:$0xff] %vm78_vm0, %v1184_v56 }
 0x1e6   :  { %v1108_v34 = vpop.permute.xlu1 %1107 }
 0x1e7   :  { %v1187_v19 = vadd.f32 %v1108_v34, %v963_v13  ;;  %v1188_v60 = vadd.f32 %v1108_v34, %v964_v30 }
 0x1e9   :  { %1251 = vst [vmem:[%s3093_s3 + $0x1a0] sm:$0xff] %v1187_v19  ;;  %1252 = vst.msk [vmem:[%s3093_s3 + $0x1a8] sm:$0xff] %vm78_vm0, %v1188_v60 }
 0x1ea   :  { %v1118_v58 = vpop.permute.xlu1 %1117 }
 0x1eb   :  { %v1191_v59 = vadd.f32 %v1118_v58, %v967_v24  ;;  %v1192_v28 = vadd.f32 %v1118_v58, %v968_v3 }
 0x1ed   :  { %1255 = vst [vmem:[%s3093_s3 + $0x1c0] sm:$0xff] %v1191_v59  ;;  %1256 = vst.msk [vmem:[%s3093_s3 + $0x1c8] sm:$0xff] %vm78_vm0, %v1192_v28 }
 0x1ee   :  { %v1128_v51 = vpop.permute.xlu1 %1127 }
 0x1ef   :  { %v1195_v8 = vadd.f32 %v1128_v51, %v971_v14  ;;  %v1196_v7 = vadd.f32 %v1128_v51, %v972_v10 }
 0x1f1   :  { %1259 = vst [vmem:[%s3093_s3 + $0x1e0] sm:$0xff] %v1195_v8  ;;  %1260 = vst.msk [vmem:[%s3093_s3 + $0x1e8] sm:$0xff] %vm78_vm0, %v1196_v7 }

</bundles_post_ra>
